<compile_context>
chip_gen: v6e
topology: v6e:2x2x1
jax: 0.10.0
libtpu: 0.0.40
codegen_flags: <defaults>
</compile_context>

<pallas_src>
import functools

import jax
import jax.numpy as jnp
from jax.experimental import pallas as pl
from jax.experimental.pallas import tpu as pltpu

# Raw and lane-padded dimensions.
IN_RAW, H1_RAW, H2_RAW = 784, 500, 100   # 784 is kept unpadded (K of matmul 1)
H1_P, H2_P, C_P = 512, 128, 128          # lane-aligned hidden / class dims


def _round_up(n, m):
    return ((n + m - 1) // m) * m


def _mlp_kernel(x_ref, w1_ref, b1_ref, w2_ref, b2_ref, w3_ref, b3_ref, o_ref):
    # Fused 3-layer MLP: bf16 matmuls on the MXU with f32 accumulation,
    # bias-add + ReLU in f32 on the VPU.  x_ref is already bf16.
    h1 = jnp.dot(x_ref[...], w1_ref[...],
                 preferred_element_type=jnp.float32)                    # (tb, 512) f32
    h1 = jnp.maximum(h1 + b1_ref[...], 0.0)
    h2 = jnp.dot(h1.astype(jnp.bfloat16), w2_ref[...],
                 preferred_element_type=jnp.float32)                    # (tb, 128) f32
    h2 = jnp.maximum(h2 + b2_ref[...], 0.0)
    out = jnp.dot(h2.astype(jnp.bfloat16), w3_ref[...],
                  preferred_element_type=jnp.float32)                   # (tb, 128) f32
    o_ref[...] = (out + b3_ref[...]).astype(o_ref.dtype)                # bf16 writeback


def pack_params(params, num_classes):
    """Zero-pad to lane-aligned shapes (w1 keeps K=784); weights bf16, biases f32."""
    w1 = jnp.pad(params["w1"], ((0, 0), (0, H1_P - H1_RAW)))                    # (784, 512)
    w2 = jnp.pad(params["w2"], ((0, H1_P - H1_RAW), (0, H2_P - H2_RAW)))        # (512, 128)
    w3 = jnp.pad(params["w3"], ((0, H2_P - H2_RAW), (0, C_P - num_classes)))    # (128, 128)
    b1 = jnp.pad(params["b1"], ((0, 0), (0, H1_P - H1_RAW)))
    b2 = jnp.pad(params["b2"], ((0, 0), (0, H2_P - H2_RAW)))
    b3 = jnp.pad(params["b3"], ((0, 0), (0, C_P - num_classes)))
    return {
        "w1": w1.astype(jnp.bfloat16), "b1": b1.astype(jnp.float32),
        "w2": w2.astype(jnp.bfloat16), "b2": b2.astype(jnp.float32),
        "w3": w3.astype(jnp.bfloat16), "b3": b3.astype(jnp.float32),
    }


@functools.partial(jax.jit, static_argnames=("num_classes", "block_b"))
def perceptron_forward(x, packed, num_classes, block_b=512):
    """x: (B, 784).  packed: output of pack_params.  Returns (B, num_classes) f32."""
    B = x.shape[0]

    # Stream x as bf16 (no feature padding, no batch round-up).  This is a
    # no-op if the caller already supplies bf16 inputs.
    x_bf = x.astype(jnp.bfloat16)

    # Batch tile: <= block_b, multiple of 16 (bf16 sublane packing) and chosen
    # so large batches yield at least 2 grid steps (keeps both v7x TensorCores
    # busy under dimension_semantics=("parallel",)).
    tb = max(16, min(block_b, _round_up(pl.cdiv(B, 2), 16)))
    tb = _round_up(tb, 16)
    num_tiles = pl.cdiv(B, tb)        # partial last tile is masked by Pallas

    w1, b1 = packed["w1"], packed["b1"]
    w2, b2 = packed["w2"], packed["b2"]
    w3, b3 = packed["w3"], packed["b3"]

    # Weights/biases stay resident in VMEM across grid steps.
    resident = lambda a: pl.BlockSpec(a.shape, lambda i: (0,) * a.ndim)

    flops = 2 * B * (IN_RAW * H1_P + H1_P * H2_P + H2_P * C_P)
    bytes_accessed = (
        B * (IN_RAW * 2 + C_P * 2)                                  # x in, logits out (bf16)
        + 2 * (IN_RAW * H1_P + H1_P * H2_P + H2_P * C_P)            # bf16 weights
        + 4 * (H1_P + H2_P + C_P))                                  # f32 biases

    out_full = pl.pallas_call(
        _mlp_kernel,
        out_shape=jax.ShapeDtypeStruct((B, C_P), jnp.bfloat16),
        grid=(num_tiles,),
        in_specs=[
            pl.BlockSpec((tb, IN_RAW), lambda i: (i, 0)),   # x tile, streamed/pipelined
            resident(w1), resident(b1),
            resident(w2), resident(b2),
            resident(w3), resident(b3),
        ],
        out_specs=pl.BlockSpec((tb, C_P), lambda i: (i, 0)),
        compiler_params=pltpu.CompilerParams(
            dimension_semantics=("parallel",)),
        cost_estimate=pl.CostEstimate(
            flops=flops, transcendentals=0, bytes_accessed=bytes_accessed),
    )(x_bf, w1, b1, w2, b2, w3, b3)

    # Slice off lane padding; return f32 logits (tiny convert on (B, num_classes)).
    return out_full[:, :num_classes].astype(jnp.float32)


def init_params(key, num_classes):
    """Matches torch.nn.Linear default init: W, b ~ U(-1/sqrt(fan_in), 1/sqrt(fan_in)).
    Weights stored pre-transposed as (in_features, out_features); biases as (1, out)."""
    dims = [(IN_RAW, H1_RAW), (H1_RAW, H2_RAW), (H2_RAW, num_classes)]
    params = {}
    keys = jax.random.split(key, 2 * len(dims))
    for i, (fan_in, fan_out) in enumerate(dims):
        bound = 1.0 / jnp.sqrt(fan_in)
        params[f"w{i+1}"] = jax.random.uniform(
            keys[2 * i], (fan_in, fan_out), jnp.float32, -bound, bound)
        params[f"b{i+1}"] = jax.random.uniform(
            keys[2 * i + 1], (1, fan_out), jnp.float32, -bound, bound)
    return params


def reference_forward_packed(x, packed, num_classes):
    """Same numerics as the kernel (bf16 inputs/weights, f32 acc, bf16 out), pure jnp."""
    xb = x.astype(jnp.bfloat16)
    h1 = jnp.dot(xb, packed["w1"], preferred_element_type=jnp.float32) + packed["b1"]
    h1 = jnp.maximum(h1, 0.0)
    h2 = jnp.dot(h1.astype(jnp.bfloat16), packed["w2"],
                 preferred_element_type=jnp.float32) + packed["b2"]
    h2 = jnp.maximum(h2, 0.0)
    out = jnp.dot(h2.astype(jnp.bfloat16), packed["w3"],
                  preferred_element_type=jnp.float32) + packed["b3"]
    out = out.astype(jnp.bfloat16).astype(jnp.float32)   # mirror bf16 writeback
    return out[:, :num_classes]


def reference_forward_f32(x, params):
    h1 = jnp.maximum(x @ params["w1"] + params["b1"], 0.0)
    h2 = jnp.maximum(h1 @ params["w2"] + params["b2"], 0.0)
    return h2 @ params["w3"] + params["b3"]


if __name__ == "__main__":
    key = jax.random.PRNGKey(0)
    k_x, k_p = jax.random.split(key)

    B, num_classes = 64, 10
    x = jax.random.normal(k_x, (B, IN_RAW), jnp.float32)
    params = init_params(k_p, num_classes)
    packed = pack_params(params, num_classes)

    out = perceptron_forward(x, packed, num_classes)
    out = jax.block_until_ready(out)
    assert out.shape == (B, num_classes), out.shape

    # Tight check vs. a pure-jnp reference using identical numerics.
    ref_bf16 = reference_forward_packed(x, packed, num_classes)
    assert jnp.allclose(out, ref_bf16, atol=1e-2, rtol=1e-2), "mismatch vs bf16 reference"

    # Loose check vs. the full-f32 reference (bf16 quantization error only).
    ref_f32 = reference_forward_f32(x, params)
    assert jnp.allclose(out, ref_f32, atol=1e-1, rtol=1e-1), "mismatch vs f32 reference"

    print("KERNEL_OK")
</pallas_src>

<mosaic_0001>
module attributes {stable_mosaic.version = 11 : i64} {
  func.func @_mlp_kernel(%arg0: i32, %arg1: memref<32x784xbf16, #tpu.memory_space<vmem>>, %arg2: memref<784x512xbf16, #tpu.memory_space<vmem>>, %arg3: memref<1x512xf32, #tpu.memory_space<vmem>>, %arg4: memref<512x128xbf16, #tpu.memory_space<vmem>>, %arg5: memref<1x128xf32, #tpu.memory_space<vmem>>, %arg6: memref<128x128xbf16, #tpu.memory_space<vmem>>, %arg7: memref<1x128xf32, #tpu.memory_space<vmem>>, %arg8: memref<32x128xbf16, #tpu.memory_space<vmem>>) attributes {dimension_semantics = [#tpu.dimension_semantics<parallel>], iteration_bounds = array<i64: 2>, scalar_prefetch = 0 : i64, scratch_operands = 0 : i64, tpu.core_type = #tpu.core_type<tc>, window_params = [{transform_indices = @transform_0, window_bounds = array<i64: 32, 784>}, {pipeline_mode = #tpu.pipeline_mode<synchronous>, transform_indices = @transform_1, window_bounds = array<i64: 784, 512>}, {pipeline_mode = #tpu.pipeline_mode<synchronous>, transform_indices = @transform_2, window_bounds = array<i64: 1, 512>}, {pipeline_mode = #tpu.pipeline_mode<synchronous>, transform_indices = @transform_3, window_bounds = array<i64: 512, 128>}, {pipeline_mode = #tpu.pipeline_mode<synchronous>, transform_indices = @transform_4, window_bounds = array<i64: 1, 128>}, {pipeline_mode = #tpu.pipeline_mode<synchronous>, transform_indices = @transform_5, window_bounds = array<i64: 128, 128>}, {pipeline_mode = #tpu.pipeline_mode<synchronous>, transform_indices = @transform_6, window_bounds = array<i64: 1, 128>}, {transform_indices = @transform_7, window_bounds = array<i64: 32, 128>}]} {
    %c0 = arith.constant 0 : index
    %c0_0 = arith.constant 0 : index
    %0 = vector.load %arg1[%c0, %c0_0] : memref<32x784xbf16, #tpu.memory_space<vmem>>, vector<32x784xbf16>
    %c0_1 = arith.constant 0 : index
    %c0_2 = arith.constant 0 : index
    %1 = vector.load %arg2[%c0_1, %c0_2] : memref<784x512xbf16, #tpu.memory_space<vmem>>, vector<784x512xbf16>
    %cst = arith.constant dense<0.000000e+00> : vector<32x512xf32>
    %2 = tpu.matmul %0, %1, %cst {dimension_numbers = #tpu.dot_dimension_numbers<[1], [0], [0], [1], [0, 0, 1, 1], [], []>} : vector<32x784xbf16>, vector<784x512xbf16>, vector<32x512xf32> -> vector<32x512xf32>
    %c0_3 = arith.constant 0 : index
    %c0_4 = arith.constant 0 : index
    %3 = vector.load %arg3[%c0_3, %c0_4] : memref<1x512xf32, #tpu.memory_space<vmem>>, vector<1x512xf32>
    %4 = vector.broadcast %3 : vector<1x512xf32> to vector<32x512xf32>
    %5 = arith.addf %2, %4 : vector<32x512xf32>
    %cst_5 = arith.constant 0.000000e+00 : f32
    %6 = vector.broadcast %cst_5 : f32 to vector<32x512xf32>
    %7 = arith.maximumf %5, %6 : vector<32x512xf32>
    %8 = arith.truncf %7 : vector<32x512xf32> to vector<32x512xbf16>
    %c0_6 = arith.constant 0 : index
    %c0_7 = arith.constant 0 : index
    %9 = vector.load %arg4[%c0_6, %c0_7] : memref<512x128xbf16, #tpu.memory_space<vmem>>, vector<512x128xbf16>
    %cst_8 = arith.constant dense<0.000000e+00> : vector<32x128xf32>
    %10 = tpu.matmul %8, %9, %cst_8 {dimension_numbers = #tpu.dot_dimension_numbers<[1], [0], [0], [1], [0, 0, 1, 1], [], []>} : vector<32x512xbf16>, vector<512x128xbf16>, vector<32x128xf32> -> vector<32x128xf32>
    %c0_9 = arith.constant 0 : index
    %c0_10 = arith.constant 0 : index
    %11 = vector.load %arg5[%c0_9, %c0_10] : memref<1x128xf32, #tpu.memory_space<vmem>>, vector<1x128xf32>
    %12 = vector.broadcast %11 : vector<1x128xf32> to vector<32x128xf32>
    %13 = arith.addf %10, %12 : vector<32x128xf32>
    %cst_11 = arith.constant 0.000000e+00 : f32
    %14 = vector.broadcast %cst_11 : f32 to vector<32x128xf32>
    %15 = arith.maximumf %13, %14 : vector<32x128xf32>
    %16 = arith.truncf %15 : vector<32x128xf32> to vector<32x128xbf16>
    %c0_12 = arith.constant 0 : index
    %c0_13 = arith.constant 0 : index
    %17 = vector.load %arg6[%c0_12, %c0_13] : memref<128x128xbf16, #tpu.memory_space<vmem>>, vector<128x128xbf16>
    %cst_14 = arith.constant dense<0.000000e+00> : vector<32x128xf32>
    %18 = tpu.matmul %16, %17, %cst_14 {dimension_numbers = #tpu.dot_dimension_numbers<[1], [0], [0], [1], [0, 0, 1, 1], [], []>} : vector<32x128xbf16>, vector<128x128xbf16>, vector<32x128xf32> -> vector<32x128xf32>
    %c0_15 = arith.constant 0 : index
    %c0_16 = arith.constant 0 : index
    %19 = vector.load %arg7[%c0_15, %c0_16] : memref<1x128xf32, #tpu.memory_space<vmem>>, vector<1x128xf32>
    %20 = vector.broadcast %19 : vector<1x128xf32> to vector<32x128xf32>
    %21 = arith.addf %18, %20 : vector<32x128xf32>
    %22 = arith.truncf %21 : vector<32x128xf32> to vector<32x128xbf16>
    %c0_17 = arith.constant 0 : index
    %c0_18 = arith.constant 0 : index
    %23 = vector.load %arg8[%c0_17, %c0_18] : memref<32x128xbf16, #tpu.memory_space<vmem>>, vector<32x128xbf16>
    tpu.vector_store %arg8[%c0_17, %c0_18], %22 {strides = array<i32>} : memref<32x128xbf16, #tpu.memory_space<vmem>>, vector<32x128xbf16>,
    return
  }
  func.func @transform_0(%arg0: i32) -> (i32, i32) {
    %c0_i32 = arith.constant 0 : i32
    %c0_i32_0 = arith.constant 0 : i32
    return %arg0, %c0_i32 : i32, i32
  }
  func.func @transform_1(%arg0: i32) -> (i32, i32) {
    %c0_i32 = arith.constant 0 : i32
    %c0_i32_0 = arith.constant 0 : i32
    %c0_i32_1 = arith.constant 0 : i32
    return %c0_i32, %c0_i32_0 : i32, i32
  }
  func.func @transform_2(%arg0: i32) -> (i32, i32) {
    %c0_i32 = arith.constant 0 : i32
    %c0_i32_0 = arith.constant 0 : i32
    %c0_i32_1 = arith.constant 0 : i32
    return %c0_i32, %c0_i32_0 : i32, i32
  }
  func.func @transform_3(%arg0: i32) -> (i32, i32) {
    %c0_i32 = arith.constant 0 : i32
    %c0_i32_0 = arith.constant 0 : i32
    %c0_i32_1 = arith.constant 0 : i32
    return %c0_i32, %c0_i32_0 : i32, i32
  }
  func.func @transform_4(%arg0: i32) -> (i32, i32) {
    %c0_i32 = arith.constant 0 : i32
    %c0_i32_0 = arith.constant 0 : i32
    %c0_i32_1 = arith.constant 0 : i32
    return %c0_i32, %c0_i32_0 : i32, i32
  }
  func.func @transform_5(%arg0: i32) -> (i32, i32) {
    %c0_i32 = arith.constant 0 : i32
    %c0_i32_0 = arith.constant 0 : i32
    %c0_i32_1 = arith.constant 0 : i32
    return %c0_i32, %c0_i32_0 : i32, i32
  }
  func.func @transform_6(%arg0: i32) -> (i32, i32) {
    %c0_i32 = arith.constant 0 : i32
    %c0_i32_0 = arith.constant 0 : i32
    %c0_i32_1 = arith.constant 0 : i32
    return %c0_i32, %c0_i32_0 : i32, i32
  }
  func.func @transform_7(%arg0: i32) -> (i32, i32) {
    %c0_i32 = arith.constant 0 : i32
    %c0_i32_0 = arith.constant 0 : i32
    return %arg0, %c0_i32 : i32, i32
  }
}

</mosaic_0001>

<bundles_post_ra>
// kernel: perceptron_forward.1
= control target key start
LH: loop header
LB: loop body
LE: loop exit
PB: predicated region body
PF: predicated region fallthrough
CT: control target
= control target key end

     0   :  { %12 = vsyncpa [#allocation3], 0  ;;  %s3448_s24 = smov 0   ;;  %s3715_s0 = inlined_call_operand.vmem [shape: bf16[64,784], index: 0, kind: input, shape index: {}]   ;;  %s3716_s1 = inlined_call_operand.hbm [shape: bf16[784,512], index: 1, kind: input, shape index: {}]   ;;  %s3717_s2 = inlined_call_operand.vmem [shape: f32[1,512], index: 2, kind: input, shape index: {}]   ;;  %s3718_s3 = inlined_call_operand.vmem [shape: bf16[512,128], index: 3, kind: input, shape index: {}]   ;;  %s3719_s4 = inlined_call_operand.vmem [shape: f32[1,128], index: 4, kind: input, shape index: {}]   ;;  %s3720_s5 = inlined_call_operand.vmem [shape: bf16[128,128], index: 5, kind: input, shape index: {}]   ;;  %s3721_s6 = inlined_call_operand.vmem [shape: f32[1,128], index: 6, kind: input, shape index: {}]   ;;  %s3722_s7 = inlined_call_operand.vmem [shape: bf16[64,128], index: 7, kind: output, shape index: {}]  }
   0x1 LB: > { %s2615_s25 = sadd.s32 4294967295, %s3402_s24   ;;  %p2617_p0 = scmp.ge.s32.totalorder %s3402_s24, 1  ;;  %s3402_s24 = sphi %s3448_s24, %s18_s24  }
   0x2   : > { %p201_p1 = scmp.lt.s32.totalorder %s3402_s24, 3  ;;  %s3404_s26 = smov [#allocation2]  }
   0x3   : > { %s213_s27 = sshll.u32 %s3404_s26, 4  ;;  %p3462_p3 = scmp.eq.s32.totalorder %s2615_s25, 0  ;;  %s214_s27 = int_to_ptr.vmem [resolvable:$true] %s213_s27 }
   0x4   : > { %p3456_p2 = pnand %p2617_p0, %p201_p1  ;;  %s3377_s30 = scalar_lea.vmem %s214_s27, 25088 }
   0x5   : > { %p3378_p7 = scmp.ne.s32.totalorder %s214_s27, %s3377_s30  ;;  %p3385_p10 = scmp.lt.s32.totalorder %s214_s27, %s214_s27 }
   0x6   : > { %p2994_p4 = pneg %p3456_p2  ;;  %p3386_p11 = scmp.lt.s32.totalorder %s3377_s30, %s3377_s30 }
   0x8   : > { %p2995_p5 = pnand %p3462_p3, %p2994_p4  ;;  %p3387_p12 = por %p3386_p11, %p3385_p10 }
   0xa   : > { %p3368_p6 = pneg %p2995_p5 }
   0xc   : > { %p3380_p8 = pnand %p3378_p7, %p3368_p6 }
   0xe   : > { %p3381_p9 = pneg %p3380_p8 }
  0x10   : > { %p3388_p13 = pnand %p3387_p12, %p3381_p9 }
  0x12   : > { %3391 = shalt.err (!%p3388_p13)
}
  0x13   : > { %s3405_s8 = smov 256   ;;  %s3406_s9 = smov 16  }
  0x14   : > { %2997 = dma.hbm_to_vmem [thread:$0]  (!%p2995_p5), %s3716_s1, 25088, %s214_s27, [#allocation3], %s3405_s8, %s3405_s8, %s3406_s9  }
  0x15   : > { %254 = sbr.rel (%p3456_p2) target bundleno = 878 (0x36e), region = 48 }
  0x1a   : > { %3397 = dma.done.wait (%p3462_p3), [#allocation3], 25088  }
  0x1b   : > { %3399 = vsyncadd (%p3462_p3), [#allocation3], 4294942208  ;;  %v3012_v0 = vld [vmem:[#allocation2 + $0xe4] ss:$16 sps:$4 sm:$0xff]   ;;  %v3016_v2 = vld [vmem:[#allocation2 + $0xe0] ss:$16 sps:$4 sm:$0xff]  }
  0x1c   : > { %v3014_v1 = vld [vmem:[#allocation2 + $0x2e4] ss:$16 sps:$4 sm:$0xff]   ;;  %1592 = vmatprep.subr.bf16.mxu0 %v3012_v0  ;;  %v3017_v3 = vld [vmem:[#allocation2 + $0x2e0] ss:$16 sps:$4 sm:$0xff]   ;;  %s2622_s12 = sshll.u32 %s2615_s25, 2  ;;  %vm1585_vm0 = vcmask 130048  }
  0x1d   : > { %1645 = vmatprep.subr.bf16.mxu1 %v3014_v1  ;;  %v3018_v4 = vld [vmem:[#allocation2 + $0xc4] ss:$16 sps:$4 sm:$0xff]   ;;  %1593 = vmatpush1.bf16.msra.mxu0 %v3016_v2  ;;  %v3022_v6 = vld [vmem:[#allocation2 + $0xc0] ss:$16 sps:$4 sm:$0xff]   ;;  %p288_p0 = scmp.lt.s32.totalorder %s2622_s12, 7 }
  0x1e   : > { %1646 = vmatpush1.bf16.msra.mxu1 %v3017_v3  ;;  %v3020_v5 = vld [vmem:[#allocation2 + $0x2c4] ss:$16 sps:$4 sm:$0xff]   ;;  %1594 = vmatprep.subr.bf16.mxu0 %v3018_v4  ;;  %v3023_v7 = vld [vmem:[#allocation2 + $0x2c0] ss:$16 sps:$4 sm:$0xff]  }
  0x1f   : > { %1647 = vmatprep.subr.bf16.mxu1 %v3020_v5  ;;  %v3024_v8 = vld [vmem:[#allocation2 + $0xa4] ss:$16 sps:$4 sm:$0xff]   ;;  %v3028_v10 = vld [vmem:[#allocation2 + $0xa0] ss:$16 sps:$4 sm:$0xff]   ;;  %s3726_s12 = smov (!%p288_p0, %s2622_s12), 7 }
  0x20   : > { %v3026_v9 = vld [vmem:[#allocation2 + $0x2a4] ss:$16 sps:$4 sm:$0xff]   ;;  %v3029_v11 = vld [vmem:[#allocation2 + $0x2a0] ss:$16 sps:$4 sm:$0xff]   ;;  %s2989_s13 = smul.u32 28, %s3726_s12  ;;  %s2625_s19 = sshll.u32 %s3726_s12, 2 }
  0x21   : > { %1595 = vmatpush1.bf16.msra.mxu0 %v3022_v6  ;;  %v3030_v12 = vld [vmem:[#allocation2 + $0x84] ss:$16 sps:$4 sm:$0xff]   ;;  %v3034_v14 = vld [vmem:[#allocation2 + $0x80] ss:$16 sps:$4 sm:$0xff]   ;;  %s298_s22 = scalar_lea.vmem %s3722_s7, %s2625_s19 }
  0x22   : > { %1648 = vmatpush1.bf16.msra.mxu1 %v3023_v7  ;;  %1596 = vmatprep.subr.bf16.mxu0 %v3024_v8  ;;  %v3032_v13 = vld [vmem:[#allocation2 + $0x284] ss:$16 sps:$4 sm:$0xff]   ;;  %v3035_v15 = vld [vmem:[#allocation2 + $0x280] ss:$16 sps:$4 sm:$0xff]   ;;  %s3487_s16 = scalar_lea.vmem %s3715_s0, %s2989_s13 }
  0x23   : > { %1649 = vmatprep.subr.bf16.mxu1 %v3026_v9  ;;  %v3036_v16 = vld [vmem:[#allocation2 + $0x64] ss:$16 sps:$4 sm:$0xff]   ;;  %v3040_v18 = vld [vmem:[#allocation2 + $0x60] ss:$16 sps:$4 sm:$0xff]   ;;  %v3493_v51 = vld [vmem:[%s3487_s16 + $0xc] ss:$28 sps:$4 sm:$0xff]  }
  0x24   : > { %v3038_v17 = vld [vmem:[#allocation2 + $0x264] ss:$16 sps:$4 sm:$0xff]   ;;  %v3041_v19 = vld [vmem:[#allocation2 + $0x260] ss:$16 sps:$4 sm:$0xff]   ;;  %1677 = vmatprep.mubr.bf16.mxu1 %v3493_v51  ;;  %v3504_v9 = vld [vmem:[%s3487_s16 + $0x3c] ss:$28 sps:$4 sm:$0xff]  }
  0x25   : > { %1597 = vmatpush1.bf16.msra.mxu0 %v3028_v10  ;;  %v3042_v20 = vld [vmem:[#allocation2 + $0x44] ss:$16 sps:$4 sm:$0xff]   ;;  %v3046_v22 = vld [vmem:[#allocation2 + $0x40] ss:$16 sps:$4 sm:$0xff]  }
  0x26   : > { %1650 = vmatpush1.bf16.msra.mxu1 %v3029_v11  ;;  %1598 = vmatprep.subr.bf16.mxu0 %v3030_v12  ;;  %v3044_v21 = vld [vmem:[#allocation2 + $0x244] ss:$16 sps:$4 sm:$0xff]   ;;  %v3047_v23 = vld [vmem:[#allocation2 + $0x240] ss:$16 sps:$4 sm:$0xff]   ;;  %v3137_v11 = vld [vmem:[#allocation2 + $0xec] ss:$16 sps:$4 sm:$0xff]  }
  0x27   : > { %1651 = vmatprep.subr.bf16.mxu1 %v3032_v13  ;;  %v3048_v24 = vld [vmem:[#allocation2 + $0x24] ss:$16 sps:$4 sm:$0xff]   ;;  %v3052_v26 = vld [vmem:[#allocation2 + $0x20] ss:$16 sps:$4 sm:$0xff]  }
  0x28   : > { %v3050_v25 = vld [vmem:[#allocation2 + $0x224] ss:$16 sps:$4 sm:$0xff]   ;;  %v3053_v27 = vld [vmem:[#allocation2 + $0x220] ss:$16 sps:$4 sm:$0xff]  }
  0x29   : > { %1599 = vmatpush1.bf16.msra.mxu0 %v3034_v14  ;;  %v3054_v28 = vld [vmem:[#allocation2 + $0x4] ss:$16 sps:$4 sm:$0xff]   ;;  %v3058_v30 = vld [vmem:[#allocation2] ss:$16 sps:$4 sm:$0xff]  }
  0x2a   : > { %1652 = vmatpush1.bf16.msra.mxu1 %v3035_v15  ;;  %1600 = vmatprep.subr.bf16.mxu0 %v3036_v16  ;;  %v3056_v29 = vld [vmem:[#allocation2 + $0x204] ss:$16 sps:$4 sm:$0xff]   ;;  %v3059_v31 = vld [vmem:[#allocation2 + $0x200] ss:$16 sps:$4 sm:$0xff]  }
  0x2b   : > { %1653 = vmatprep.subr.bf16.mxu1 %v3038_v17  ;;  %v3060_v32 = vld [vmem:[#allocation2 + $0x1e4] ss:$16 sps:$4 sm:$0xff]   ;;  %v3064_v34 = vld [vmem:[#allocation2 + $0x1e0] ss:$16 sps:$4 sm:$0xff]  }
  0x2c   : > { %v3062_v33 = vld [vmem:[#allocation2 + $0x3e4] ss:$16 sps:$4 sm:$0xff]   ;;  %v3065_v35 = vld [vmem:[#allocation2 + $0x3e0] ss:$16 sps:$4 sm:$0xff]  }
  0x2d   : > { %1601 = vmatpush1.bf16.msra.mxu0 %v3040_v18  ;;  %v3066_v36 = vld [vmem:[#allocation2 + $0x1c4] ss:$16 sps:$4 sm:$0xff]   ;;  %v3070_v38 = vld [vmem:[#allocation2 + $0x1c0] ss:$16 sps:$4 sm:$0xff]  }
  0x2e   : > { %1654 = vmatpush1.bf16.msra.mxu1 %v3041_v19  ;;  %1602 = vmatprep.subr.bf16.mxu0 %v3042_v20  ;;  %v3068_v37 = vld [vmem:[#allocation2 + $0x3c4] ss:$16 sps:$4 sm:$0xff]   ;;  %v3071_v39 = vld [vmem:[#allocation2 + $0x3c0] ss:$16 sps:$4 sm:$0xff]   ;;  %v3407_v19 = vmov 0  }
  0x2f   : > { %1655 = vmatprep.subr.bf16.mxu1 %v3044_v21  ;;  %v3072_v40 = vld [vmem:[#allocation2 + $0x1a4] ss:$16 sps:$4 sm:$0xff]   ;;  %v3076_v42 = vld [vmem:[#allocation2 + $0x1a0] ss:$16 sps:$4 sm:$0xff]   ;;  %v3135_v21 = vld [vmem:[#allocation2 + $0xe8] ss:$16 sps:$4 sm:$0xff]  }
  0x30   : > { %v3074_v41 = vld [vmem:[#allocation2 + $0x3a4] ss:$16 sps:$4 sm:$0xff]   ;;  %v3077_v43 = vld [vmem:[#allocation2 + $0x3a0] ss:$16 sps:$4 sm:$0xff]  }
  0x31   : > { %1603 = vmatpush1.bf16.msra.mxu0 %v3046_v22  ;;  %v3078_v44 = vld [vmem:[#allocation2 + $0x184] ss:$16 sps:$4 sm:$0xff]   ;;  %v3082_v46 = vld [vmem:[#allocation2 + $0x180] ss:$16 sps:$4 sm:$0xff]  }
  0x32   : > { %1656 = vmatpush1.bf16.msra.mxu1 %v3047_v23  ;;  %1604 = vmatprep.subr.bf16.mxu0 %v3048_v24  ;;  %v3080_v45 = vld [vmem:[#allocation2 + $0x384] ss:$16 sps:$4 sm:$0xff]   ;;  %v3083_v47 = vld [vmem:[#allocation2 + $0x380] ss:$16 sps:$4 sm:$0xff]   ;;  %v3144_v24 = vld [vmem:[#allocation2 + $0xcc] ss:$16 sps:$4 sm:$0xff]  }
  0x33   : > { %1657 = vmatprep.subr.bf16.mxu1 %v3050_v25  ;;  %v3084_v48 = vld [vmem:[#allocation2 + $0x164] ss:$16 sps:$4 sm:$0xff]   ;;  %v3088_v52 = vld [vmem:[#allocation2 + $0x160] ss:$16 sps:$4 sm:$0xff]  }
  0x34   : > { %v3490_v49 = vld [vmem:[%s3487_s16 + $0x4] ss:$28 sps:$4 sm:$0xff]   ;;  %v3514_v14 = vld [vmem:[%s3487_s16 + $0x38] ss:$28 sps:$4 sm:$0xff]  }
  0x35   : > { %1605 = vmatpush1.bf16.msra.mxu0 %v3052_v26  ;;  %v3086_v50 = vld [vmem:[#allocation2 + $0x364] ss:$16 sps:$4 sm:$0xff]   ;;  %1624 = vmatprep.mubr.bf16.mxu0 %v3490_v49  ;;  %v3089_v53 = vld [vmem:[#allocation2 + $0x360] ss:$16 sps:$4 sm:$0xff]   ;;  %v3142_v26 = vld [vmem:[#allocation2 + $0xc8] ss:$16 sps:$4 sm:$0xff]  }
  0x36   : > { %1658 = vmatpush1.bf16.msra.mxu1 %v3053_v27  ;;  %1606 = vmatprep.subr.bf16.mxu0 %v3054_v28  ;;  %v3090_v54 = vld [vmem:[#allocation2 + $0x144] ss:$16 sps:$4 sm:$0xff]   ;;  %v3094_v56 = vld [vmem:[#allocation2 + $0x140] ss:$16 sps:$4 sm:$0xff]   ;;  %v3150_v28 = vld [vmem:[#allocation2 + $0xac] ss:$16 sps:$4 sm:$0xff]  }
  0x37   : > { %1659 = vmatprep.subr.bf16.mxu1 %v3056_v29  ;;  %v3092_v55 = vld [vmem:[#allocation2 + $0x344] ss:$16 sps:$4 sm:$0xff]   ;;  %v3095_v57 = vld [vmem:[#allocation2 + $0x340] ss:$16 sps:$4 sm:$0xff]  }
  0x38   : > { %v3096_v58 = vld [vmem:[#allocation2 + $0x124] ss:$16 sps:$4 sm:$0xff]   ;;  %v3100_v60 = vld [vmem:[#allocation2 + $0x120] ss:$16 sps:$4 sm:$0xff]  }
  0x39   : > { %1607 = vmatpush1.bf16.msra.mxu0 %v3058_v30  ;;  %v3098_v59 = vld [vmem:[#allocation2 + $0x324] ss:$16 sps:$4 sm:$0xff]   ;;  %v3101_v61 = vld [vmem:[#allocation2 + $0x320] ss:$16 sps:$4 sm:$0xff]   ;;  %v3148_v30 = vld [vmem:[#allocation2 + $0xa8] ss:$16 sps:$4 sm:$0xff]  }
  0x3a   : > { %1660 = vmatpush1.bf16.msra.mxu1 %v3059_v31  ;;  %1608 = vmatprep.subr.bf16.mxu0 %v3060_v32  ;;  %v3102_v62 = vld [vmem:[#allocation2 + $0x104] ss:$16 sps:$4 sm:$0xff]   ;;  %v3106_v0 = vld [vmem:[#allocation2 + $0x100] ss:$16 sps:$4 sm:$0xff]   ;;  %v3156_v32 = vld [vmem:[#allocation2 + $0x8c] ss:$16 sps:$4 sm:$0xff]  }
  0x3b   : > { %1661 = vmatprep.subr.bf16.mxu1 %v3062_v33  ;;  %v3104_v63 = vld [vmem:[#allocation2 + $0x304] ss:$16 sps:$4 sm:$0xff]   ;;  %v3107_v1 = vld [vmem:[#allocation2 + $0x300] ss:$16 sps:$4 sm:$0xff]  }
  0x3c   : > { %v3116_v2 = vld [vmem:[#allocation2 + $0x4e4] ss:$16 sps:$4 sm:$0xff]   ;;  %v3498_v3 = vld [vmem:[%s3487_s16] ss:$28 sps:$4 sm:$0xff]  }
  0x3d   : > { %1609 = vmatpush2.bf16.msra.mxu0 %v3064_v34  ;;  %v3119_v4 = vld [vmem:[#allocation2 + $0x604] ss:$16 sps:$4 sm:$0xff]   ;;  %v3114_v6 = vld [vmem:[#allocation2 + $0x4e0] ss:$16 sps:$4 sm:$0xff]  }
  0x3e   : > { %1662 = vmatpush2.bf16.msra.mxu1 %v3065_v35  ;;  %1610 = vmatprep.subr.bf16.mxu0 %v3066_v36  ;;  %v3501_v5 = vld [vmem:[%s3487_s16 + $0x8] ss:$28 sps:$4 sm:$0xff]   ;;  %v3117_v7 = vld [vmem:[#allocation2 + $0x600] ss:$16 sps:$4 sm:$0xff]   ;;  %v3523_v22 = vld [vmem:[%s3487_s16 + $0x18] ss:$28 sps:$4 sm:$0xff]  }
  0x3f   : > { %1663 = vmatprep.subr.bf16.mxu1 %v3068_v37  ;;  %v3122_v8 = vld [vmem:[#allocation2 + $0x4c4] ss:$16 sps:$4 sm:$0xff]   ;;  %v3120_v12 = vld [vmem:[#allocation2 + $0x4c0] ss:$16 sps:$4 sm:$0xff]   ;;  %v3154_v35 = vld [vmem:[#allocation2 + $0x88] ss:$16 sps:$4 sm:$0xff]  }
  0x40   : > { %v3507_v10 = vld [vmem:[%s3487_s16 + $0x44] ss:$28 sps:$4 sm:$0xff]   ;;  %v3529_v33 = vld [vmem:[%s3487_s16 + $0x14] ss:$28 sps:$4 sm:$0xff]  }
  0x41   : > { %1611 = vmatpush2.bf16.msra.mxu0 %v3070_v38  ;;  %v3131_v13 = vld [vmem:[#allocation2 + $0x4a4] ss:$16 sps:$4 sm:$0xff]   ;;  %v3517_v15 = vld [vmem:[%s3487_s16 + $0x40] ss:$28 sps:$4 sm:$0xff]   ;;  %v3533_v37 = vld [vmem:[%s3487_s16 + $0x50] ss:$28 sps:$4 sm:$0xff]  }
  0x42   : > { %1664 = vmatpush2.bf16.msra.mxu1 %v3071_v39  ;;  %1612 = vmatprep.subr.bf16.mxu0 %v3072_v40  ;;  %v3129_v16 = vld [vmem:[#allocation2 + $0x4a0] ss:$16 sps:$4 sm:$0xff]   ;;  %v3134_v17 = vld [vmem:[#allocation2 + $0x484] ss:$16 sps:$4 sm:$0xff]   ;;  %v3162_v38 = vld [vmem:[#allocation2 + $0x6c] ss:$16 sps:$4 sm:$0xff]  }
  0x43   : > { %1665 = vmatprep.subr.bf16.mxu1 %v3074_v41  ;;  %v3132_v18 = vld [vmem:[#allocation2 + $0x480] ss:$16 sps:$4 sm:$0xff]   ;;  %v3140_v20 = vld [vmem:[#allocation2 + $0x464] ss:$16 sps:$4 sm:$0xff]   ;;  %v3160_v40 = vld [vmem:[#allocation2 + $0x68] ss:$16 sps:$4 sm:$0xff]  }
  0x44   : > { %v3138_v23 = vld [vmem:[#allocation2 + $0x460] ss:$16 sps:$4 sm:$0xff]   ;;  %v3147_v25 = vld [vmem:[#allocation2 + $0x444] ss:$16 sps:$4 sm:$0xff]  }
  0x45   : > { %1613 = vmatpush2.bf16.msra.mxu0 %v3076_v42  ;;  %v3145_v27 = vld [vmem:[#allocation2 + $0x440] ss:$16 sps:$4 sm:$0xff]   ;;  %v3153_v29 = vld [vmem:[#allocation2 + $0x424] ss:$16 sps:$4 sm:$0xff]   ;;  %v3168_v42 = vld [vmem:[#allocation2 + $0x4c] ss:$16 sps:$4 sm:$0xff]  }
  0x46   : > { %1666 = vmatpush2.bf16.msra.mxu1 %v3077_v43  ;;  %1614 = vmatprep.subr.bf16.mxu0 %v3078_v44  ;;  %v3151_v31 = vld [vmem:[#allocation2 + $0x420] ss:$16 sps:$4 sm:$0xff]   ;;  %v3159_v34 = vld [vmem:[#allocation2 + $0x404] ss:$16 sps:$4 sm:$0xff]   ;;  %v3166_v44 = vld [vmem:[#allocation2 + $0x48] ss:$16 sps:$4 sm:$0xff]  }
  0x47   : > { %1667 = vmatprep.subr.bf16.mxu1 %v3080_v45  ;;  %v3157_v36 = vld [vmem:[#allocation2 + $0x400] ss:$16 sps:$4 sm:$0xff]   ;;  %v3165_v39 = vld [vmem:[#allocation2 + $0x5e4] ss:$16 sps:$4 sm:$0xff]  }
  0x48   : > { %v3163_v41 = vld [vmem:[#allocation2 + $0x5e0] ss:$16 sps:$4 sm:$0xff]   ;;  %v3171_v43 = vld [vmem:[#allocation2 + $0x5c4] ss:$16 sps:$4 sm:$0xff]  }
  0x49   : > { %1615 = vmatpush2.bf16.msra.mxu0 %v3082_v46  ;;  %v3169_v45 = vld [vmem:[#allocation2 + $0x5c0] ss:$16 sps:$4 sm:$0xff]   ;;  %v3174_v46 = vld [vmem:[#allocation2 + $0x2c] ss:$16 sps:$4 sm:$0xff]  }
  0x4a   : > { %1668 = vmatpush2.bf16.msra.mxu1 %v3083_v47  ;;  %1616 = vmatprep.subr.bf16.mxu0 %v3084_v48  ;;  %v3177_v47 = vld [vmem:[#allocation2 + $0x5a4] ss:$16 sps:$4 sm:$0xff]   ;;  %v3172_v48 = vld [vmem:[#allocation2 + $0x28] ss:$16 sps:$4 sm:$0xff]  }
  0x4b   : > { %1669 = vmatprep.subr.bf16.mxu1 %v3086_v50  ;;  %v3175_v50 = vld [vmem:[#allocation2 + $0x5a0] ss:$16 sps:$4 sm:$0xff]  }
  0x4d   : > { %1617 = vmatpush2.bf16.msra.mxu0 %v3088_v52  ;;  %v3183_v52 = vld [vmem:[#allocation2 + $0x584] ss:$16 sps:$4 sm:$0xff]  }
  0x4e   : > { %1670 = vmatpush2.bf16.msra.mxu1 %v3089_v53  ;;  %1618 = vmatprep.subr.bf16.mxu0 %v3090_v54  ;;  %v3178_v53 = vld [vmem:[#allocation2 + $0x8] ss:$16 sps:$4 sm:$0xff]   ;;  %v3181_v54 = vld [vmem:[#allocation2 + $0x580] ss:$16 sps:$4 sm:$0xff]  }
  0x4f   : > { %1671 = vmatprep.subr.bf16.mxu1 %v3092_v55  ;;  %v3186_v55 = vld [vmem:[#allocation2 + $0x1ec] ss:$16 sps:$4 sm:$0xff]  }
  0x51   : > { %1619 = vmatpush2.bf16.msra.mxu0 %v3094_v56  ;;  %v3189_v56 = vld [vmem:[#allocation2 + $0x564] ss:$16 sps:$4 sm:$0xff]  }
  0x52   : > { %1672 = vmatpush2.bf16.msra.mxu1 %v3095_v57  ;;  %1620 = vmatprep.subr.bf16.mxu0 %v3096_v58  ;;  %v3184_v57 = vld [vmem:[#allocation2 + $0x1e8] ss:$16 sps:$4 sm:$0xff]   ;;  %v3187_v58 = vld [vmem:[#allocation2 + $0x560] ss:$16 sps:$4 sm:$0xff]  }
  0x53   : > { %1673 = vmatprep.subr.bf16.mxu1 %v3098_v59  ;;  %v3192_v59 = vld [vmem:[#allocation2 + $0x1cc] ss:$16 sps:$4 sm:$0xff]  }
  0x55   : > { %1621 = vmatpush2.bf16.msra.mxu0 %v3100_v60  ;;  %v3195_v60 = vld [vmem:[#allocation2 + $0x544] ss:$16 sps:$4 sm:$0xff]  }
  0x56   : > { %1674 = vmatpush2.bf16.msra.mxu1 %v3101_v61  ;;  %1622 = vmatprep.subr.bf16.mxu0 %v3102_v62  ;;  %v3190_v61 = vld [vmem:[#allocation2 + $0x1c8] ss:$16 sps:$4 sm:$0xff]   ;;  %v3193_v62 = vld [vmem:[#allocation2 + $0x540] ss:$16 sps:$4 sm:$0xff]  }
  0x57   : > { %1675 = vmatprep.subr.bf16.mxu1 %v3104_v63  ;;  %v3198_v63 = vld [vmem:[#allocation2 + $0x1ac] ss:$16 sps:$4 sm:$0xff]  }
  0x59   : > { %1623 = vmatpush2.bf16.msra.mxu0 %v3106_v0  ;;  %v3201_v0 = vld [vmem:[#allocation2 + $0x524] ss:$16 sps:$4 sm:$0xff]  }
  0x5a   : > { %1676 = vmatpush2.bf16.msra.mxu1 %v3107_v1  ;;  %1698 = vmatprep.subr.bf16.mxu0 %v3116_v2  ;;  %v3196_v1 = vld [vmem:[#allocation2 + $0x1a8] ss:$16 sps:$4 sm:$0xff]   ;;  %v3199_v2 = vld [vmem:[#allocation2 + $0x520] ss:$16 sps:$4 sm:$0xff]  }
  0x5b   : > { %1765 = vmatprep.subr.bf16.mxu1 %v3119_v4  ;;  %v3204_v4 = vld [vmem:[#allocation2 + $0x18c] ss:$16 sps:$4 sm:$0xff]  }
  0x5c   : > { %1625 = vmatmul.mubr.bf16.vlgmr.msra.gmra.mxu0 %v3498_v3 }
  0x5d   : > { %1678 = vmatmul.mubr.bf16.vlgmr.msra.gmra.mxu1 %v3501_v5  ;;  %1699 = vmatpush1.bf16.msra.mxu0 %v3114_v6  ;;  %v3207_v6 = vld [vmem:[#allocation2 + $0x504] ss:$16 sps:$4 sm:$0xff]  }
  0x5e   : > { %1766 = vmatpush1.bf16.msra.mxu1 %v3117_v7  ;;  %1700 = vmatprep.subr.bf16.mxu0 %v3122_v8  ;;  %v3202_v7 = vld [vmem:[#allocation2 + $0x188] ss:$16 sps:$4 sm:$0xff]   ;;  %v3205_v8 = vld [vmem:[#allocation2 + $0x500] ss:$16 sps:$4 sm:$0xff]  }
  0x5f   : > { %1634 = vmatprep.mubr.bf16.mxu0 %v3504_v9  ;;  %1687 = vmatprep.mubr.bf16.mxu1 %v3507_v10 }
  0x60   : > { %1804 = vmatprep.subr.bf16.mxu1 %v3137_v11  ;;  %v3213_v11 = vld [vmem:[#allocation2 + $0x16c] ss:$16 sps:$4 sm:$0xff]  }
  0x61   : > { %1701 = vmatpush1.bf16.msra.mxu0 %v3120_v12  ;;  %v3216_v12 = vld [vmem:[#allocation2 + $0x2ec] ss:$16 sps:$4 sm:$0xff]  }
  0x62   : > { %1702 = vmatprep.subr.bf16.mxu0 %v3131_v13  ;;  %v3539_v13 = vld [vmem:[%s3487_s16 + $0x10] ss:$28 sps:$4 sm:$0xff]  }
  0x64   : > { %1635 = vmatmul.mubr.bf16.gmra.mxu0 %v3514_v14 }
  0x65   : > { %1688 = vmatmul.mubr.bf16.gmra.mxu1 %v3517_v15  ;;  %1703 = vmatpush1.bf16.msra.mxu0 %v3129_v16  ;;  %v3211_v16 = vld [vmem:[#allocation2 + $0x168] ss:$16 sps:$4 sm:$0xff]  }
  0x66   : > { %1783 = vmatprep.mubr.bf16.mxu1 %v3407_v19  ;;  %1704 = vmatprep.subr.bf16.mxu0 %v3134_v17  ;;  %v3214_v17 = vld [vmem:[#allocation2 + $0x2e8] ss:$16 sps:$4 sm:$0xff]  }
  0x67   : > { %1730 = vmatprep.mubr.bf16.mxu0 %v3529_v33 }
  0x69   : > { %1705 = vmatpush1.bf16.msra.mxu0 %v3132_v18  ;;  %v3220_v18 = vld [vmem:[#allocation2 + $0x14c] ss:$16 sps:$4 sm:$0xff]  }
  0x6a   : > { %1706 = vmatprep.subr.bf16.mxu0 %v3140_v20  ;;  %v3223_v20 = vld [vmem:[#allocation2 + $0x2cc] ss:$16 sps:$4 sm:$0xff]  }
  0x6d   : > { %2836 = vmatmul.mubr.msk.bf16.vlgmr.msra.gmra.mxu1 %vm1585_vm0, %v3523_v22  ;;  %1707 = vmatpush1.bf16.msra.mxu0 %v3138_v23  ;;  %v3218_v23 = vld [vmem:[#allocation2 + $0x148] ss:$16 sps:$4 sm:$0xff]  }
  0x6e   : > { %1805 = vmatpush1.bf16.msra.mxu1 %v3135_v21  ;;  %1708 = vmatprep.subr.bf16.mxu0 %v3147_v25  ;;  %v3542_v21 = vld [vmem:[%s3487_s16 + $0x4c] ss:$28 sps:$4 sm:$0xff]  }
  0x6f   : > { %1806 = vmatprep.subr.bf16.mxu1 %v3144_v24  ;;  %1793 = vmatprep.mubr.bf16.mxu1 %v3407_v19  ;;  %v3221_v24 = vld [vmem:[#allocation2 + $0x2c8] ss:$16 sps:$4 sm:$0xff]   ;;  %v3228_v25 = vld [vmem:[#allocation2 + $0x12c] ss:$16 sps:$4 sm:$0xff]  }
  0x71   : > { %1709 = vmatpush1.bf16.msra.mxu0 %v3145_v27  ;;  %v3547_v27 = vld [vmem:[%s3487_s16 + $0x48] ss:$28 sps:$4 sm:$0xff]  }
  0x72   : > { %1807 = vmatpush1.bf16.msra.mxu1 %v3142_v26  ;;  %1710 = vmatprep.subr.bf16.mxu0 %v3153_v29  ;;  %v3232_v26 = vld [vmem:[#allocation2 + $0x2ac] ss:$16 sps:$4 sm:$0xff]   ;;  %v3230_v29 = vld [vmem:[#allocation2 + $0x2a8] ss:$16 sps:$4 sm:$0xff]  }
  0x73   : > { %1808 = vmatprep.subr.bf16.mxu1 %v3150_v28  ;;  %v3226_v28 = vld [vmem:[#allocation2 + $0x128] ss:$16 sps:$4 sm:$0xff]  }
  0x75   : > { %1711 = vmatpush1.bf16.msra.mxu0 %v3151_v31  ;;  %2837 = vmatmul.mubr.msk.bf16.gmra.mxu1 %vm1585_vm0, %v3533_v37  ;;  %v3238_v31 = vld [vmem:[#allocation2 + $0x28c] ss:$16 sps:$4 sm:$0xff]  }
  0x76   : > { %1809 = vmatpush1.bf16.msra.mxu1 %v3148_v30  ;;  %1712 = vmatprep.subr.bf16.mxu0 %v3159_v34  ;;  %v3235_v30 = vld [vmem:[#allocation2 + $0x10c] ss:$16 sps:$4 sm:$0xff]   ;;  %v3236_v34 = vld [vmem:[#allocation2 + $0x288] ss:$16 sps:$4 sm:$0xff]  }
  0x77   : > { %1810 = vmatprep.subr.bf16.mxu1 %v3156_v32  ;;  %1836 = vmatprep.mubr.bf16.mxu1 %v3490_v49  ;;  %v3180_v49 = vld [vmem:[#allocation2 + $0xc] ss:$16 sps:$4 sm:$0xff]   ;;  %v3233_v32 = vld [vmem:[#allocation2 + $0x108] ss:$16 sps:$4 sm:$0xff]  }
  0x79   : > { %1713 = vmatpush1.bf16.msra.mxu0 %v3157_v36  ;;  %v3244_v36 = vld [vmem:[#allocation2 + $0x26c] ss:$16 sps:$4 sm:$0xff]  }
  0x7a   : > { %1811 = vmatpush1.bf16.msra.mxu1 %v3154_v35  ;;  %1714 = vmatprep.subr.bf16.mxu0 %v3165_v39  ;;  %v3241_v35 = vld [vmem:[#allocation2 + $0x4ec] ss:$16 sps:$4 sm:$0xff]   ;;  %v3242_v39 = vld [vmem:[#allocation2 + $0x268] ss:$16 sps:$4 sm:$0xff]  }
  0x7b   : > { %1812 = vmatprep.subr.bf16.mxu1 %v3162_v38  ;;  %v3239_v38 = vld [vmem:[#allocation2 + $0x4e8] ss:$16 sps:$4 sm:$0xff]  }
  0x7d   : > { %1715 = vmatpush2.bf16.msra.mxu0 %v3163_v41  ;;  %v3250_v41 = vld [vmem:[#allocation2 + $0x24c] ss:$16 sps:$4 sm:$0xff]  }
  0x7e   : > { %1813 = vmatpush1.bf16.msra.mxu1 %v3160_v40  ;;  %1716 = vmatprep.subr.bf16.mxu0 %v3171_v43  ;;  %v3247_v40 = vld [vmem:[#allocation2 + $0x4cc] ss:$16 sps:$4 sm:$0xff]   ;;  %v3248_v43 = vld [vmem:[#allocation2 + $0x248] ss:$16 sps:$4 sm:$0xff]  }
  0x7f   : > { %1814 = vmatprep.subr.bf16.mxu1 %v3168_v42  ;;  %v3245_v42 = vld [vmem:[#allocation2 + $0x4c8] ss:$16 sps:$4 sm:$0xff]  }
  0x81   : > { %1717 = vmatpush2.bf16.msra.mxu0 %v3169_v45  ;;  %v3256_v45 = vld [vmem:[#allocation2 + $0x22c] ss:$16 sps:$4 sm:$0xff]  }
  0x82   : > { %1815 = vmatpush1.bf16.msra.mxu1 %v3166_v44  ;;  %1718 = vmatprep.subr.bf16.mxu0 %v3177_v47  ;;  %v3253_v44 = vld [vmem:[#allocation2 + $0x4ac] ss:$16 sps:$4 sm:$0xff]   ;;  %v3254_v47 = vld [vmem:[#allocation2 + $0x228] ss:$16 sps:$4 sm:$0xff]  }
  0x83   : > { %1816 = vmatprep.subr.bf16.mxu1 %v3174_v46  ;;  %v3251_v46 = vld [vmem:[#allocation2 + $0x4a8] ss:$16 sps:$4 sm:$0xff]  }
  0x85   : > { %1719 = vmatpush2.bf16.msra.mxu0 %v3175_v50  ;;  %v3257_v50 = vld [vmem:[#allocation2 + $0x488] ss:$16 sps:$4 sm:$0xff]  }
  0x86   : > { %1817 = vmatpush1.bf16.msra.mxu1 %v3172_v48  ;;  %1720 = vmatprep.subr.bf16.mxu0 %v3183_v52  ;;  %v3262_v48 = vld [vmem:[#allocation2 + $0x20c] ss:$16 sps:$4 sm:$0xff]  }
  0x87   : > { %1818 = vmatprep.subr.bf16.mxu1 %v3180_v49  ;;  %v3260_v49 = vld [vmem:[#allocation2 + $0x208] ss:$16 sps:$4 sm:$0xff]   ;;  %v3265_v52 = vld [vmem:[#allocation2 + $0x46c] ss:$16 sps:$4 sm:$0xff]  }
  0x89   : > { %1721 = vmatpush2.bf16.msra.mxu0 %v3181_v54  ;;  %v3266_v54 = vld [vmem:[#allocation2 + $0x3e8] ss:$16 sps:$4 sm:$0xff]  }
  0x8a   : > { %1819 = vmatpush1.bf16.msra.mxu1 %v3178_v53  ;;  %1722 = vmatprep.subr.bf16.mxu0 %v3189_v56  ;;  %v3263_v53 = vld [vmem:[#allocation2 + $0x468] ss:$16 sps:$4 sm:$0xff]  }
  0x8b   : > { %1820 = vmatprep.subr.bf16.mxu1 %v3186_v55  ;;  %v3274_v55 = vld [vmem:[#allocation2 + $0x3cc] ss:$16 sps:$4 sm:$0xff]   ;;  %v3269_v56 = vld [vmem:[#allocation2 + $0x448] ss:$16 sps:$4 sm:$0xff]  }
  0x8d   : > { %1723 = vmatpush2.bf16.msra.mxu0 %v3187_v58  ;;  %v3277_v58 = vld [vmem:[#allocation2 + $0x42c] ss:$16 sps:$4 sm:$0xff]  }
  0x8e   : > { %1821 = vmatpush2.bf16.msra.mxu1 %v3184_v57  ;;  %1724 = vmatprep.subr.bf16.mxu0 %v3195_v60  ;;  %v3272_v57 = vld [vmem:[#allocation2 + $0x3c8] ss:$16 sps:$4 sm:$0xff]  }
  0x8f   : > { %1822 = vmatprep.subr.bf16.mxu1 %v3192_v59  ;;  %v3280_v59 = vld [vmem:[#allocation2 + $0x3ac] ss:$16 sps:$4 sm:$0xff]   ;;  %v3278_v60 = vld [vmem:[#allocation2 + $0x3a8] ss:$16 sps:$4 sm:$0xff]  }
  0x91   : > { %1725 = vmatpush2.bf16.msra.mxu0 %v3193_v62  ;;  %v3286_v62 = vld [vmem:[#allocation2 + $0x38c] ss:$16 sps:$4 sm:$0xff]  }
  0x92   : > { %1823 = vmatpush2.bf16.msra.mxu1 %v3190_v61  ;;  %1726 = vmatprep.subr.bf16.mxu0 %v3201_v0  ;;  %v3283_v61 = vld [vmem:[#allocation2 + $0x40c] ss:$16 sps:$4 sm:$0xff]  }
  0x93   : > { %1824 = vmatprep.subr.bf16.mxu1 %v3198_v63  ;;  %v3284_v63 = vld [vmem:[#allocation2 + $0x388] ss:$16 sps:$4 sm:$0xff]   ;;  %v3289_v0 = vld [vmem:[#allocation2 + $0x5ec] ss:$16 sps:$4 sm:$0xff]  }
  0x95   : > { %1727 = vmatpush2.bf16.msra.mxu0 %v3199_v2  ;;  %v3287_v2 = vld [vmem:[#allocation2 + $0x5e8] ss:$16 sps:$4 sm:$0xff]  }
  0x96   : > { %1825 = vmatpush2.bf16.msra.mxu1 %v3196_v1  ;;  %1728 = vmatprep.subr.bf16.mxu0 %v3207_v6  ;;  %v3292_v1 = vld [vmem:[#allocation2 + $0x36c] ss:$16 sps:$4 sm:$0xff]  }
  0x97   : > { %1826 = vmatprep.subr.bf16.mxu1 %v3204_v4  ;;  %v3290_v4 = vld [vmem:[#allocation2 + $0x368] ss:$16 sps:$4 sm:$0xff]   ;;  %v3295_v6 = vld [vmem:[#allocation2 + $0x5cc] ss:$16 sps:$4 sm:$0xff]  }
  0x99   : > { %1729 = vmatpush2.bf16.msra.mxu0 %v3205_v8  ;;  %v3293_v8 = vld [vmem:[#allocation2 + $0x5c8] ss:$16 sps:$4 sm:$0xff]  }
  0x9a   : > { %1827 = vmatpush2.bf16.msra.mxu1 %v3202_v7  ;;  %1857 = vmatprep.subr.bf16.mxu0 %v3216_v12  ;;  %v3298_v7 = vld [vmem:[#allocation2 + $0x34c] ss:$16 sps:$4 sm:$0xff]  }
  0x9b   : > { %1828 = vmatprep.subr.bf16.mxu1 %v3213_v11  ;;  %v3296_v11 = vld [vmem:[#allocation2 + $0x348] ss:$16 sps:$4 sm:$0xff]   ;;  %v3301_v12 = vld [vmem:[#allocation2 + $0x5ac] ss:$16 sps:$4 sm:$0xff]  }
  0x9c   : > { %1731 = vmatmul.mubr.bf16.vlgmr.msra.gmra.mxu0 %v3539_v13 }
  0x9d   : > { %1858 = vmatpush1.bf16.msra.mxu0 %v3214_v17  ;;  %1740 = vmatprep.mubr.bf16.mxu0 %v3542_v21  ;;  %v3299_v17 = vld [vmem:[#allocation2 + $0x5a8] ss:$16 sps:$4 sm:$0xff]  }
  0x9e   : > { %1829 = vmatpush2.bf16.msra.mxu1 %v3211_v16  ;;  %1859 = vmatprep.subr.bf16.mxu0 %v3223_v20  ;;  %v3304_v16 = vld [vmem:[#allocation2 + $0x32c] ss:$16 sps:$4 sm:$0xff]  }
  0x9f   : > { %1830 = vmatprep.subr.bf16.mxu1 %v3220_v18  ;;  %v3302_v18 = vld [vmem:[#allocation2 + $0x328] ss:$16 sps:$4 sm:$0xff]   ;;  %v3307_v20 = vld [vmem:[#allocation2 + $0x58c] ss:$16 sps:$4 sm:$0xff]  }
  0xa1   : > { %1860 = vmatpush1.bf16.msra.mxu0 %v3221_v24  ;;  %v3305_v24 = vld [vmem:[#allocation2 + $0x588] ss:$16 sps:$4 sm:$0xff]  }
  0xa2   : > { %1831 = vmatpush2.bf16.msra.mxu1 %v3218_v23  ;;  %1861 = vmatprep.subr.bf16.mxu0 %v3232_v26  ;;  %v3310_v23 = vld [vmem:[#allocation2 + $0x30c] ss:$16 sps:$4 sm:$0xff]  }
  0xa3   : > { %1832 = vmatprep.subr.bf16.mxu1 %v3228_v25  ;;  %v3308_v25 = vld [vmem:[#allocation2 + $0x308] ss:$16 sps:$4 sm:$0xff]   ;;  %v3313_v26 = vld [vmem:[#allocation2 + $0x56c] ss:$16 sps:$4 sm:$0xff]  }
  0xa4   : > { %1741 = vmatmul.mubr.bf16.gmra.mxu0 %v3547_v27 }
  0xa5   : > { %1862 = vmatpush1.bf16.msra.mxu0 %v3230_v29  ;;  %1889 = vmatprep.mubr.bf16.mxu0 %v3493_v51  ;;  %v3259_v51 = vld [vmem:[#allocation2 + $0x48c] ss:$16 sps:$4 sm:$0xff]   ;;  %v3311_v29 = vld [vmem:[#allocation2 + $0x568] ss:$16 sps:$4 sm:$0xff]  }
  0xa6   : > { %1833 = vmatpush2.bf16.msra.mxu1 %v3226_v28  ;;  %1863 = vmatprep.subr.bf16.mxu0 %v3238_v31  ;;  %v3326_v28 = vld [vmem:[%s3718_s3 + $0x78] sm:$0xff]  }
  0xa7   : > { %1834 = vmatprep.subr.bf16.mxu1 %v3235_v30  ;;  %v3316_v30 = vld [vmem:[#allocation2 + $0x54c] ss:$16 sps:$4 sm:$0xff]  }
  0xa8   : > { %v3327_v31 = vld [vmem:[%s3718_s3 + $0x38] sm:$0xff]  }
  0xa9   : > { %1864 = vmatpush1.bf16.msra.mxu0 %v3236_v34  ;;  %v3314_v34 = vld [vmem:[#allocation2 + $0x548] ss:$16 sps:$4 sm:$0xff]  }
  0xaa   : > { %1835 = vmatpush2.bf16.msra.mxu1 %v3233_v32  ;;  %1865 = vmatprep.subr.bf16.mxu0 %v3244_v36  ;;  %v3328_v32 = vld [vmem:[%s3718_s3 + $0x70] sm:$0xff]  }
  0xab   : > { %1910 = vmatprep.subr.bf16.mxu1 %v3241_v35  ;;  %v3319_v35 = vld [vmem:[#allocation2 + $0x52c] ss:$16 sps:$4 sm:$0xff]   ;;  %v3329_v36 = vld [vmem:[%s3718_s3 + $0x30] sm:$0xff]  }
  0xad   : > { %1837 = vmatmul.mubr.bf16.vlgmr.msra.gmra.mxu1 %v3498_v3  ;;  %1866 = vmatpush1.bf16.msra.mxu0 %v3242_v39  ;;  %v3268_v3 = vld [vmem:[#allocation2 + $0x3ec] ss:$16 sps:$4 sm:$0xff]   ;;  %v3317_v39 = vld [vmem:[#allocation2 + $0x528] ss:$16 sps:$4 sm:$0xff]  }
  0xae   : > { %1911 = vmatpush1.bf16.msra.mxu1 %v3239_v38  ;;  %1867 = vmatprep.subr.bf16.mxu0 %v3250_v41  ;;  %v3330_v38 = vld [vmem:[%s3718_s3 + $0x68] sm:$0xff]  }
  0xaf   : > { %1912 = vmatprep.subr.bf16.mxu1 %v3247_v40  ;;  %1846 = vmatprep.mubr.bf16.mxu1 %v3504_v9  ;;  %v3271_v9 = vld [vmem:[#allocation2 + $0x44c] ss:$16 sps:$4 sm:$0xff]   ;;  %v3332_v40 = vld [vmem:[%s3718_s3 + $0x60] sm:$0xff]   ;;  %v3320_v41 = vld [vmem:[#allocation2 + $0x508] ss:$16 sps:$4 sm:$0xff]  }
  0xb1   : > { %1868 = vmatpush1.bf16.msra.mxu0 %v3248_v43  ;;  %v3333_v43 = vld [vmem:[%s3718_s3 + $0x20] sm:$0xff]  }
  0xb2   : > { %1913 = vmatpush1.bf16.msra.mxu1 %v3245_v42  ;;  %1869 = vmatprep.subr.bf16.mxu0 %v3256_v45  ;;  %v3325_v42 = vld [vmem:[#allocation2 + $0x60c] ss:$16 sps:$4 sm:$0xff]   ;;  %v3323_v45 = vld [vmem:[#allocation2 + $0x608] ss:$16 sps:$4 sm:$0xff]  }
  0xb3   : > { %1914 = vmatprep.subr.bf16.mxu1 %v3253_v44  ;;  %v3334_v44 = vld [vmem:[%s3718_s3 + $0x58] sm:$0xff]  }
  0xb5   : > { %1847 = vmatmul.mubr.bf16.gmra.mxu1 %v3514_v14  ;;  %1870 = vmatpush1.bf16.msra.mxu0 %v3254_v47  ;;  %v3275_v14 = vld [vmem:[#allocation2 + $0x428] ss:$16 sps:$4 sm:$0xff]   ;;  %v3337_v47 = vld [vmem:[%s3718_s3 + $0x10] sm:$0xff]  }
  0xb6   : > { %1915 = vmatpush1.bf16.msra.mxu1 %v3251_v46  ;;  %1871 = vmatprep.subr.bf16.mxu0 %v3262_v48  ;;  %v3336_v46 = vld [vmem:[%s3718_s3 + $0x50] sm:$0xff]   ;;  %v3339_v48 = vld [vmem:[%s3718_s3 + $0x8] sm:$0xff]  }
  0xb7   : > { %1916 = vmatprep.subr.bf16.mxu1 %v3259_v51  ;;  %1942 = vmatprep.mubr.bf16.mxu1 %v3529_v33  ;;  %v3281_v33 = vld [vmem:[#allocation2 + $0x408] ss:$16 sps:$4 sm:$0xff]  }
  0xb8   : > { %v3338_v51 = vld [vmem:[%s3718_s3 + $0x48] sm:$0xff]  }
  0xb9   : > { %1872 = vmatpush1.bf16.msra.mxu0 %v3260_v49  ;;  %v3344_v49 = vld [vmem:[%s3718_s3 + $0xf0] sm:$0xff]  }
  0xba   : > { %1917 = vmatpush1.bf16.msra.mxu1 %v3257_v50  ;;  %1873 = vmatprep.subr.bf16.mxu0 %v3268_v3  ;;  %v3343_v50 = vld [vmem:[%s3718_s3 + $0xb8] sm:$0xff]   ;;  %v3348_v3 = vld [vmem:[%s3718_s3 + $0xe0] sm:$0xff]  }
  0xbb   : > { %1918 = vmatprep.subr.bf16.mxu1 %v3265_v52 }
  0xbd   : > { %1874 = vmatpush2.bf16.msra.mxu0 %v3266_v54 }
  0xbe   : > { %1919 = vmatpush1.bf16.msra.mxu1 %v3263_v53  ;;  %1875 = vmatprep.subr.bf16.mxu0 %v3274_v55  ;;  %v3349_v53 = vld [vmem:[%s3718_s3 + $0xa0] sm:$0xff]   ;;  %v3351_v55 = vld [vmem:[%s3718_s3 + $0x98] sm:$0xff]  }
  0xbf   : > { %1920 = vmatprep.subr.bf16.mxu1 %v3271_v9  ;;  %v3350_v9 = vld [vmem:[%s3718_s3 + $0xd8] sm:$0xff]  }
  0xc1   : > { %1876 = vmatpush2.bf16.msra.mxu0 %v3272_v57  ;;  %v3352_v57 = vld [vmem:[%s3718_s3 + $0xd0] sm:$0xff]  }
  0xc2   : > { %1921 = vmatpush1.bf16.msra.mxu1 %v3269_v56  ;;  %1877 = vmatprep.subr.bf16.mxu0 %v3280_v59 }
  0xc3   : > { %1922 = vmatprep.subr.bf16.mxu1 %v3277_v58  ;;  %v3353_v58 = vld [vmem:[%s3718_s3 + $0x90] sm:$0xff]  }
  0xc5   : > { %1878 = vmatpush2.bf16.msra.mxu0 %v3278_v60  ;;  %v3354_v60 = vld [vmem:[%s3718_s3 + $0xc8] sm:$0xff]  }
  0xc6   : > { %1923 = vmatpush1.bf16.msra.mxu1 %v3275_v14  ;;  %1879 = vmatprep.subr.bf16.mxu0 %v3286_v62 }
  0xc7   : > { %1924 = vmatprep.subr.bf16.mxu1 %v3283_v61  ;;  %v3355_v61 = vld [vmem:[%s3718_s3 + $0x88] sm:$0xff]  }
  0xc9   : > { %1880 = vmatpush2.bf16.msra.mxu0 %v3284_v63  ;;  %v3356_v63 = vld [vmem:[%s3718_s3 + $0xc0] sm:$0xff]  }
  0xca   : > { %1925 = vmatpush1.bf16.msra.mxu1 %v3281_v33  ;;  %1881 = vmatprep.subr.bf16.mxu0 %v3292_v1 }
  0xcb   : > { %1926 = vmatprep.subr.bf16.mxu1 %v3289_v0  ;;  %v3357_v0 = vld [vmem:[%s3718_s3 + $0x80] sm:$0xff]  }
  0xcd   : > { %1882 = vmatpush2.bf16.msra.mxu0 %v3290_v4  ;;  %v515_v4 = vlaneseq }
  0xce   : > { %1927 = vmatpush2.bf16.msra.mxu1 %v3287_v2  ;;  %1883 = vmatprep.subr.bf16.mxu0 %v3298_v7 }
  0xcf   : > { %1928 = vmatprep.subr.bf16.mxu1 %v3295_v6 }
  0xd1   : > { %1884 = vmatpush2.bf16.msra.mxu0 %v3296_v11 }
  0xd2   : > { %1929 = vmatpush2.bf16.msra.mxu1 %v3293_v8  ;;  %1885 = vmatprep.subr.bf16.mxu0 %v3304_v16  ;;  %v3663_v8 = vshrl.u32 %v515_v4, 7 }
  0xd3   : > { %1930 = vmatprep.subr.bf16.mxu1 %v3301_v12 }
  0xd4   : > { %v521_v16 = vsub.s32 1, %v3663_v8 }
  0xd5   : > { %1886 = vmatpush2.bf16.msra.mxu0 %v3302_v18 }
  0xd6   : > { %1931 = vmatpush2.bf16.msra.mxu1 %v3299_v17  ;;  %1887 = vmatprep.subr.bf16.mxu0 %v3310_v23  ;;  %v517_v17 = vsub.s32 0, %v3663_v8  ;;  %v3670_v23 = vld [vmem:[%s3717_s2] sm:$0xf] }
  0xd7   : > { %1932 = vmatprep.subr.bf16.mxu1 %v3307_v20 }
  0xd9   : > { %1888 = vmatpush2.bf16.msra.mxu0 %v3308_v25  ;;  %v518_v25 = vrot.slane %v3670_v23, %v517_v17 }
  0xda   : > { %1933 = vmatpush2.bf16.msra.mxu1 %v3305_v24  ;;  %2903 = vmatprep.subr.bf16.mxu0 %v3326_v28  ;;  %v522_v24 = vrot.slane %v3670_v23, %v521_v16 }
  0xdb   : > { %1934 = vmatprep.subr.bf16.mxu1 %v3313_v26 }
  0xdc   : > { %1890 = vmatmul.mubr.bf16.vlgmr.msra.gmra.mxu0 %v3501_v5  ;;  %v3322_v5 = vld [vmem:[#allocation2 + $0x50c] ss:$16 sps:$4 sm:$0xff]  }
  0xdd   : > { %1899 = vmatprep.mubr.bf16.mxu0 %v3507_v10  ;;  %2904 = vmatpush3.bf16.msra.mxu0 %v3327_v31  ;;  %v3331_v10 = vld [vmem:[%s3718_s3 + $0x28] sm:$0xff]  }
  0xde   : > { %1935 = vmatpush2.bf16.msra.mxu1 %v3311_v29  ;;  %2905 = vmatprep.subr.bf16.mxu0 %v3328_v32 }
  0xdf   : > { %1936 = vmatprep.subr.bf16.mxu1 %v3316_v30 }
  0xe1   : > { %2906 = vmatpush3.bf16.msra.mxu0 %v3329_v36 }
  0xe2   : > { %1937 = vmatpush2.bf16.msra.mxu1 %v3314_v34  ;;  %2907 = vmatprep.subr.bf16.mxu0 %v3330_v38 }
  0xe3   : > { %1938 = vmatprep.subr.bf16.mxu1 %v3319_v35 }
  0xe4   : > { %1900 = vmatmul.mubr.bf16.gmra.mxu0 %v3517_v15  ;;  %v3335_v15 = vld [vmem:[%s3718_s3 + $0x18] sm:$0xff]  }
  0xe5   : > { %2908 = vmatpush3.bf16.msra.mxu0 %v3331_v10 }
  0xe6   : > { %1939 = vmatpush2.bf16.msra.mxu1 %v3317_v39  ;;  %2909 = vmatprep.subr.bf16.mxu0 %v3332_v40 }
  0xe7   : > { %1940 = vmatprep.subr.bf16.mxu1 %v3322_v5 }
  0xe9   : > { %2910 = vmatpush3.bf16.msra.mxu0 %v3333_v43 }
  0xea   : > { %1941 = vmatpush2.bf16.msra.mxu1 %v3320_v41  ;;  %2911 = vmatprep.subr.bf16.mxu0 %v3334_v44 }
  0xeb   : > { %1977 = vmatprep.subr.bf16.mxu1 %v3325_v42 }
  0xed   : > { %1943 = vmatmul.mubr.bf16.vlgmr.msra.gmra.mxu1 %v3539_v13  ;;  %2912 = vmatpush3.bf16.msra.mxu0 %v3335_v15  ;;  %v3340_v13 = vld [vmem:[%s3718_s3 + $0x40] sm:$0xff]  }
  0xee   : > { %1978 = vmatpush1.bf16.msra.mxu1 %v3323_v45  ;;  %1952 = vmatprep.mubr.bf16.mxu1 %v3542_v21  ;;  %v3341_v21 = vld [vmem:[%s3718_s3] sm:$0xff]  }
  0xef   : > { %2913 = vmatprep.subr.bf16.mxu0 %v3336_v46 }
  0xf1   : > { %2914 = vmatpush3.bf16.msra.mxu0 %v3337_v47 }
  0xf2   : > { %2915 = vmatprep.subr.bf16.mxu0 %v3338_v51 }
  0xf5   : > { %1953 = vmatmul.mubr.bf16.gmra.mxu1 %v3547_v27  ;;  %2916 = vmatpush3.bf16.msra.mxu0 %v3339_v48  ;;  %v3342_v27 = vld [vmem:[%s3718_s3 + $0xf8] sm:$0xff]  }
  0xf6   : > { %1995 = vmatprep.mubr.bf16.mxu1 %v3407_v19  ;;  %2917 = vmatprep.subr.bf16.mxu0 %v3340_v13 }
  0xf7   : > { %2931 = vmatprep.subr.bf16.mxu1 %v3342_v27 }
  0xf9   : > { %2918 = vmatpush3.bf16.msra.mxu0 %v3341_v21 }
  0xfd   : > { %2838 = vmatmul.mubr.msk.bf16.vlgmr.msra.gmra.mxu1 %vm1585_vm0, %v3523_v22  ;;  %v3346_v22 = vld [vmem:[%s3718_s3 + $0xe8] sm:$0xff]  }
  0xfe   : > { %2005 = vmatprep.mubr.bf16.mxu1 %v3407_v19  ;;  %2932 = vmatpush3.bf16.msra.mxu1 %v3343_v50  ;;  %v3345_v19 = vld [vmem:[%s3718_s3 + $0xb0] sm:$0xff]  }
  0xff   : > { %2933 = vmatprep.subr.bf16.mxu1 %v3344_v49 }
 0x102   : > { %2934 = vmatpush3.bf16.msra.mxu1 %v3345_v19 }
 0x103   : > { %2935 = vmatprep.subr.bf16.mxu1 %v3346_v22 }
 0x105   : > { %2839 = vmatmul.mubr.msk.bf16.gmra.mxu1 %vm1585_vm0, %v3533_v37  ;;  %v3347_v37 = vld [vmem:[%s3718_s3 + $0xa8] sm:$0xff]  }
 0x106   : > { %2936 = vmatpush3.bf16.msra.mxu1 %v3347_v37 }
 0x107   : > { %2937 = vmatprep.subr.bf16.mxu1 %v3348_v3 }
 0x10a   : > { %2938 = vmatpush3.bf16.msra.mxu1 %v3349_v53 }
 0x10b   : > { %2939 = vmatprep.subr.bf16.mxu1 %v3350_v9 }
 0x10e   : > { %2940 = vmatpush3.bf16.msra.mxu1 %v3351_v55 }
 0x10f   : > { %2941 = vmatprep.subr.bf16.mxu1 %v3352_v57 }
 0x112   : > { %2942 = vmatpush3.bf16.msra.mxu1 %v3353_v58 }
 0x113   : > { %2943 = vmatprep.subr.bf16.mxu1 %v3354_v60 }
 0x116   : > { %2944 = vmatpush3.bf16.msra.mxu1 %v3355_v61 }
 0x117   : > { %2945 = vmatprep.subr.bf16.mxu1 %v3356_v63 }
 0x11a   : > { %2946 = vmatpush3.bf16.msra.mxu1 %v3357_v0 }
 0x11c   : > { %v1626_v59 = vpop.f32.mrf.mxu0 }
 0x11d   : > { %v1679_v52 = vpop.f32.mrf.mxu1  ;;  %v1627_v30 = vadd.f32 %v1626_v59, %v518_v25 }
 0x11e   : > { %v1628_v62 = vpop.f32.mrf.mxu0 }
 0x11f   : > { %v1681_v54 = vpop.f32.mrf.mxu1  ;;  %v1629_v29 = vadd.f32 %v1628_v62, %v522_v24  ;;  %v1680_v39 = vadd.f32 %v1679_v52, %v1627_v30 }
 0x120   : > { %v1630_v1 = vpop.f32.mrf.mxu0 }
 0x121   : > { %v1683_v56 = vpop.f32.mrf.mxu1  ;;  %v1631_v34 = vadd.f32 %v1630_v1, %v518_v25  ;;  %v1682_v36 = vadd.f32 %v1681_v54, %v1629_v29 }
 0x122   : > { %v1632_v6 = vpop.f32.mrf.mxu0 }
 0x123   : > { %v1685_v14 = vpop.f32.mrf.mxu1  ;;  %v1633_v38 = vadd.f32 %v1632_v6, %v522_v24  ;;  %v1684_v40 = vadd.f32 %v1683_v56, %v1631_v34 }
 0x124   : > { %v1636_v11 = vpop.f32.mrf.mxu0 }
 0x125   : > { %v1689_v33 = vpop.f32.mrf.mxu1  ;;  %v1686_v45 = vadd.f32 %v1685_v14, %v1633_v38  ;;  %v1637_v47 = vadd.f32 %v1636_v11, %v518_v25 }
 0x126   : > { %v1638_v18 = vpop.f32.mrf.mxu0 }
 0x127   : > { %v1691_v2 = vpop.f32.mrf.mxu1  ;;  %v1639_v15 = vadd.f32 %v1638_v18, %v522_v24  ;;  %v1690_v3 = vadd.f32 %v1689_v33, %v1637_v47 }
 0x128   : > { %v1640_v26 = vpop.f32.mrf.mxu0 }
 0x129   : > { %v1693_v7 = vpop.f32.mrf.mxu1  ;;  %v1641_v48 = vadd.f32 %v1640_v26, %v518_v25  ;;  %v1692_v22 = vadd.f32 %v1691_v2, %v1639_v15 }
 0x12a   : > { %v1642_v31 = vpop.f32.mrf.mxu0 }
 0x12b   : > { %v1695_v12 = vpop.f32.mrf.mxu1  ;;  %v1643_v37 = vadd.f32 %v1642_v31, %v522_v24  ;;  %v1694_v9 = vadd.f32 %v1693_v7, %v1641_v48 }
 0x12d   : > { %v1785_v20 = vpop.f32.mrf.mxu1  ;;  %v1696_v61 = vadd.f32 %v1695_v12, %v1643_v37 }
 0x12f   : > { %v1787_v28 = vpop.f32.mrf.mxu1 }
 0x131   : > { %v1789_v32 = vpop.f32.mrf.mxu1 }
 0x133   : > { %v1791_v5 = vpop.f32.mrf.mxu1 }
 0x135   : > { %v1795_v43 = vpop.f32.mrf.mxu1 }
 0x137   : > { %v1797_v49 = vpop.f32.mrf.mxu1 }
 0x139   : > { %v1799_v59 = vpop.f32.mrf.mxu1 }
 0x13b   : > { %v1801_v11 = vpop.f32.mrf.mxu1 }
 0x15c   : > { %v1732_v35 = vpop.f32.mrf.mxu0 }
 0x15d   : > { %v1733_v42 = vadd.f32 %v1732_v35, %v1680_v39 }
 0x15e   : > { %v1734_v10 = vpop.f32.mrf.mxu0 }
 0x15f   : > { %v1735_v41 = vadd.f32 %v1734_v10, %v1682_v36  ;;  %v1786_v50 = vadd.f32 %v1785_v20, %v1733_v42  ;;  %v525_v42 = vsub.s32 2, %v3663_v8 }
 0x160   : > { %v1736_v44 = vpop.f32.mrf.mxu0 }
 0x161   : > { %v1737_v46 = vadd.f32 %v1736_v44, %v1684_v40  ;;  %v1788_v13 = vadd.f32 %v1787_v28, %v1735_v41  ;;  %v2016_v58 = vmax.f32 %v1786_v50, 0.0  ;;  %v529_v41 = vsub.s32 3, %v3663_v8  ;;  %v3358_v8 = vld [vmem:[%s3720_s5 + $0x38] sm:$0xff]  }
 0x162   : > { %v1738_v51 = vpop.f32.mrf.mxu0  ;;  %2969 = vmatprep.subr.bf16.mxu0 %v3358_v8 }
 0x163   : > { %v1790_v21 = vadd.f32 %v1789_v32, %v1737_v46  ;;  %v1739_v27 = vadd.f32 %v1738_v51, %v1686_v45  ;;  %v2017_v55 = vmax.f32 %v1788_v13, 0.0  ;;  %v530_v15 = vrot.slane %v3670_v23, %v529_v41 }
 0x164   : > { %v1742_v19 = vpop.f32.mrf.mxu0  ;;  %v526_v46 = vrot.slane %v3670_v23, %v525_v42 }
 0x165   : > { %v1792_v52 = vadd.f32 %v1791_v5, %v1739_v27  ;;  %v2020_v53 = vmax.f32 %v1790_v21, 0.0  ;;  %v1743_v14 = vadd.f32 %v1742_v19, %v1690_v3 }
 0x166   : > { %v1744_v54 = vpop.f32.mrf.mxu0 }
 0x167   : > { %v2021_v56 = vmax.f32 %v1792_v52, 0.0  ;;  %v1745_v57 = vadd.f32 %v1744_v54, %v1692_v22  ;;  %v2032_v0 = vpack.c.bf16 %v2020_v53, %v2016_v58  ;;  %v1796_v33 = vadd.f32 %v1795_v43, %v1743_v14  ;;  %v3359_v52 = vld [vmem:[%s3720_s5 + $0x30] sm:$0xff]  }
 0x168   : > { %v1746_v60 = vpop.f32.mrf.mxu0 }
 0x169   : > { %v1747_v62 = vadd.f32 %v1746_v60, %v1694_v9  ;;  %v2033_v63 = vpack.c.bf16 %v2021_v56, %v2017_v55  ;;  %v1798_v4 = vadd.f32 %v1797_v49, %v1745_v57  ;;  %v2024_v20 = vmax.f32 %v1796_v33, 0.0 }
 0x16a   : > { %v1748_v1 = vpop.f32.mrf.mxu0 }
 0x16b   : > { %v1800_v2 = vadd.f32 %v1799_v59, %v1747_v62  ;;  %v1749_v6 = vadd.f32 %v1748_v1, %v1696_v61  ;;  %2335 = vmatprep.mubr.bf16.mxu0 %v2033_v63  ;;  %v2025_v17 = vmax.f32 %v1798_v4, 0.0  ;;  %v3360_v61 = vld [vmem:[%s3720_s5 + $0x28] sm:$0xff]  }
 0x16c   : > { %2336 = vmatmul.mubr.bf16.vlgmr.msra.gmra.mxu0 %v2032_v0 }
 0x16d   : > { %v1802_v7 = vadd.f32 %v1801_v11, %v1749_v6  ;;  %v2028_v16 = vmax.f32 %v1800_v2, 0.0  ;;  %v1838_v12 = vpop.f32.mrf.mxu1  ;;  %2970 = vmatpush3.bf16.msra.mxu0 %v3358_v8 }
 0x16e   : > { %v1839_v27 = vadd.f32 %v1838_v12, %v526_v46  ;;  %2971 = vmatprep.subr.bf16.mxu0 %v3359_v52 }
 0x16f   : > { %v2029_v18 = vmax.f32 %v1802_v7, 0.0  ;;  %v2036_v25 = vpack.c.bf16 %v2028_v16, %v2024_v20  ;;  %v1840_v26 = vpop.f32.mrf.mxu1 }
 0x170   : > { %v1841_v13 = vadd.f32 %v1840_v26, %v530_v15 }
 0x171   : > { %v2037_v24 = vpack.c.bf16 %v2029_v18, %v2025_v17  ;;  %v1842_v28 = vpop.f32.mrf.mxu1  ;;  %2972 = vmatpush3.bf16.msra.mxu0 %v3359_v52 }
 0x172   : > { %v1843_v21 = vadd.f32 %v1842_v28, %v526_v46  ;;  %2973 = vmatprep.subr.bf16.mxu0 %v3360_v61 }
 0x173   : > { %2343 = vmatprep.mubr.bf16.mxu0 %v2037_v24  ;;  %v1844_v29 = vpop.f32.mrf.mxu1 }
 0x174   : > { %2344 = vmatmul.mubr.bf16.gmra.mxu0 %v2036_v25  ;;  %v1845_v19 = vadd.f32 %v1844_v29, %v530_v15 }
 0x175   : > { %v1848_v30 = vpop.f32.mrf.mxu1  ;;  %2974 = vmatpush3.bf16.msra.mxu0 %v3360_v61 }
 0x176   : > { %v1849_v62 = vadd.f32 %v1848_v30, %v526_v46 }
 0x177   : > { %v1850_v31 = vpop.f32.mrf.mxu1 }
 0x178   : > { %v1851_v58 = vadd.f32 %v1850_v31, %v530_v15 }
 0x179   : > { %v1852_v32 = vpop.f32.mrf.mxu1 }
 0x17a   : > { %v1853_v1 = vadd.f32 %v1852_v32, %v526_v46  ;;  %v3363_v46 = vld [vmem:[%s3720_s5 + $0x10] sm:$0xff]  }
 0x17b   : > { %v1854_v35 = vpop.f32.mrf.mxu1 }
 0x17c   : > { %v1855_v2 = vadd.f32 %v1854_v35, %v530_v15  ;;  %v3362_v15 = vld [vmem:[%s3720_s5 + $0x18] sm:$0xff]  }
 0x19c   : > { %v1891_v34 = vpop.f32.mrf.mxu0 }
 0x19d   : > { %v1892_v23 = vadd.f32 %v1891_v34, %v1839_v27 }
 0x19e   : > { %v1893_v36 = vpop.f32.mrf.mxu0 }
 0x19f   : > { %v1894_v22 = vadd.f32 %v1893_v36, %v1841_v13 }
 0x1a0   : > { %v1895_v5 = vpop.f32.mrf.mxu0 }
 0x1a1   : > { %v1896_v37 = vadd.f32 %v1895_v5, %v1843_v21 }
 0x1a2   : > { %v1897_v43 = vpop.f32.mrf.mxu0 }
 0x1a3   : > { %v1898_v53 = vadd.f32 %v1897_v43, %v1845_v19 }
 0x1a4   : > { %v1901_v47 = vpop.f32.mrf.mxu0 }
 0x1a5   : > { %v1902_v20 = vadd.f32 %v1901_v47, %v1849_v62  ;;  %v3364_v47 = vld [vmem:[%s3720_s5 + $0x8] sm:$0xff]  }
 0x1a6   : > { %v1903_v50 = vpop.f32.mrf.mxu0 }
 0x1a7   : > { %v1904_v7 = vadd.f32 %v1903_v50, %v1851_v58 }
 0x1a8   : > { %v1905_v55 = vpop.f32.mrf.mxu0 }
 0x1a9   : > { %v1906_v16 = vadd.f32 %v1905_v55, %v1853_v1 }
 0x1aa   : > { %v1907_v6 = vpop.f32.mrf.mxu0 }
 0x1ab   : > { %v1908_v12 = vadd.f32 %v1907_v6, %v1855_v2 }
 0x1ad   : > { %v1944_v38 = vpop.f32.mrf.mxu1 }
 0x1ae   : > { %v1945_v56 = vadd.f32 %v1944_v38, %v1892_v23 }
 0x1af   : > { %v1946_v39 = vpop.f32.mrf.mxu1 }
 0x1b0   : > { %v1947_v54 = vadd.f32 %v1946_v39, %v1894_v22 }
 0x1b1   : > { %v1948_v10 = vpop.f32.mrf.mxu1 }
 0x1b2   : > { %v1949_v9 = vadd.f32 %v1948_v10, %v1896_v37  ;;  %v2840_v37 = vld [vmem:[%s3719_s4] ss:$0 sm:$0xff] }
 0x1b3   : > { %v1950_v40 = vpop.f32.mrf.mxu1 }
 0x1b4   : > { %v1951_v59 = vadd.f32 %v1950_v40, %v1898_v53 }
 0x1b5   : > { %v1954_v44 = vpop.f32.mrf.mxu1 }
 0x1b6   : > { %v1955_v30 = vadd.f32 %v1954_v44, %v1902_v20  ;;  %v3361_v44 = vld [vmem:[%s3720_s5 + $0x20] sm:$0xff]  }
 0x1b7   : > { %v1956_v45 = vpop.f32.mrf.mxu1  ;;  %2975 = vmatprep.subr.bf16.mxu0 %v3361_v44 }
 0x1b8   : > { %v1957_v26 = vadd.f32 %v1956_v45, %v1904_v7  ;;  %2976 = vmatpush3.bf16.msra.mxu0 %v3361_v44 }
 0x1b9   : > { %v1958_v51 = vpop.f32.mrf.mxu1  ;;  %2977 = vmatprep.subr.bf16.mxu0 %v3362_v15 }
 0x1ba   : > { %v1959_v28 = vadd.f32 %v1958_v51, %v1906_v16  ;;  %v3365_v51 = vld [vmem:[%s3720_s5] sm:$0xff]  }
 0x1bb   : > { %v1960_v48 = vpop.f32.mrf.mxu1 }
 0x1bc   : > { %v1961_v34 = vadd.f32 %v1960_v48, %v1908_v12  ;;  %2978 = vmatpush3.bf16.msra.mxu0 %v3362_v15 }
 0x1bd   : > { %v1997_v49 = vpop.f32.mrf.mxu1  ;;  %2979 = vmatprep.subr.bf16.mxu0 %v3363_v46 }
 0x1be   : > { %v1998_v63 = vadd.f32 %v1997_v49, %v1945_v56 }
 0x1bf   : > { %v1999_v3 = vpop.f32.mrf.mxu1 }
 0x1c0   : > { %v2000_v14 = vadd.f32 %v1999_v3, %v1947_v54  ;;  %v2018_v24 = vmax.f32 %v1998_v63, 0.0  ;;  %2980 = vmatpush3.bf16.msra.mxu0 %v3363_v46 }
 0x1c1   : > { %v2001_v57 = vpop.f32.mrf.mxu1  ;;  %2981 = vmatprep.subr.bf16.mxu0 %v3364_v47 }
 0x1c2   : > { %v2002_v60 = vadd.f32 %v2001_v57, %v1949_v9  ;;  %v2019_v17 = vmax.f32 %v2000_v14, 0.0 }
 0x1c3   : > { %v2003_v0 = vpop.f32.mrf.mxu1 }
 0x1c4   : > { %v2004_v4 = vadd.f32 %v2003_v0, %v1951_v59  ;;  %v2022_v33 = vmax.f32 %v2002_v60, 0.0  ;;  %2982 = vmatpush3.bf16.msra.mxu0 %v3364_v47 }
 0x1c5   : > { %v2007_v11 = vpop.f32.mrf.mxu1  ;;  %2983 = vmatprep.subr.bf16.mxu0 %v3365_v51 }
 0x1c6   : > { %v2023_v18 = vmax.f32 %v2004_v4, 0.0  ;;  %v2034_v31 = vpack.c.bf16 %v2022_v33, %v2018_v24  ;;  %v2008_v38 = vadd.f32 %v2007_v11, %v1955_v30 }
 0x1c7   : > { %v2009_v25 = vpop.f32.mrf.mxu1 }
 0x1c8   : > { %v2035_v29 = vpack.c.bf16 %v2023_v18, %v2019_v17  ;;  %v2010_v35 = vadd.f32 %v2009_v25, %v1957_v26  ;;  %v2026_v42 = vmax.f32 %v2008_v38, 0.0  ;;  %2984 = vmatpush3.bf16.msra.mxu0 %v3365_v51 }
 0x1c9   : > { %v2011_v32 = vpop.f32.mrf.mxu1 }
 0x1ca   : > { %v2012_v36 = vadd.f32 %v2011_v32, %v1959_v28  ;;  %2384 = vmatprep.mubr.bf16.mxu1 %v2035_v29  ;;  %v2027_v40 = vmax.f32 %v2010_v35, 0.0  ;;  %v2873_v28 = vld [vmem:[%s3721_s6] ss:$0 sm:$0xff] }
 0x1cb   : > { %v2013_v39 = vpop.f32.mrf.mxu1  ;;  %2385 = vmatmul.mubr.bf16.vlgmr.msra.gmra.mxu1 %v2034_v31 }
 0x1cc   : > { %v2014_v5 = vadd.f32 %v2013_v39, %v1961_v34  ;;  %v2030_v10 = vmax.f32 %v2012_v36, 0.0 }
 0x1ce   : > { %v2031_v41 = vmax.f32 %v2014_v5, 0.0  ;;  %v2038_v45 = vpack.c.bf16 %v2030_v10, %v2026_v42 }
 0x1d0   : > { %v2039_v43 = vpack.c.bf16 %v2031_v41, %v2027_v40 }
 0x1d2   : > { %2392 = vmatprep.mubr.bf16.mxu1 %v2039_v43 }
 0x1d3   : > { %2393 = vmatmul.mubr.bf16.gmra.mxu1 %v2038_v45 }
 0x22c   : > { %v2919_v48 = vpop.f32.mrf.mxu0 }
 0x22e   : > { %v2920_v13 = vpop.f32.mrf.mxu0 }
 0x22f   : > { %v2921_v22 = vadd.f32 %v2920_v13, %v2919_v48 }
 0x230   : > { %v2922_v21 = vpop.f32.mrf.mxu0 }
 0x231   : > { %v2338_v54 = vadd.f32 %v2921_v22, %v2840_v37 }
 0x232   : > { %v2923_v27 = vpop.f32.mrf.mxu0 }
 0x233   : > { %v2924_v52 = vadd.f32 %v2923_v27, %v2922_v21 }
 0x234   : > { %v2925_v50 = vpop.f32.mrf.mxu0 }
 0x235   : > { %v2341_v55 = vadd.f32 %v2924_v52, %v2840_v37 }
 0x236   : > { %v2926_v49 = vpop.f32.mrf.mxu0 }
 0x237   : > { %v2927_v14 = vadd.f32 %v2926_v49, %v2925_v50 }
 0x238   : > { %v2928_v3 = vpop.f32.mrf.mxu0 }
 0x239   : > { %v2346_v2 = vadd.f32 %v2927_v14, %v2840_v37 }
 0x23a   : > { %v2929_v58 = vpop.f32.mrf.mxu0 }
 0x23b   : > { %v2930_v62 = vadd.f32 %v2929_v58, %v2928_v3 }
 0x23d   : > { %v2349_v11 = vadd.f32 %v2930_v62, %v2840_v37 }
 0x28b   : > { %v2947_v19 = vpop.f32.mrf.mxu1 }
 0x28d   : > { %v2948_v8 = vpop.f32.mrf.mxu1 }
 0x28e   : > { %v2949_v23 = vadd.f32 %v2948_v8, %v2947_v19 }
 0x28f   : > { %v2950_v53 = vpop.f32.mrf.mxu1 }
 0x290   : > { %v2387_v56 = vadd.f32 %v2949_v23, %v2338_v54 }
 0x291   : > { %v2951_v9 = vpop.f32.mrf.mxu1 }
 0x292   : > { %v2952_v57 = vadd.f32 %v2951_v9, %v2950_v53  ;;  %v2401_v63 = vmax.f32 %v2387_v56, 0.0 }
 0x293   : > { %v2953_v59 = vpop.f32.mrf.mxu1 }
 0x294   : > { %v2390_v60 = vadd.f32 %v2952_v57, %v2341_v55 }
 0x295   : > { %v2954_v61 = vpop.f32.mrf.mxu1 }
 0x296   : > { %v2402_v0 = vmax.f32 %v2390_v60, 0.0  ;;  %v2955_v1 = vadd.f32 %v2954_v61, %v2953_v59 }
 0x297   : > { %v2956_v4 = vpop.f32.mrf.mxu1 }
 0x298   : > { %v2405_v6 = vpack.c.bf16 %v2402_v0, %v2401_v63  ;;  %v2395_v7 = vadd.f32 %v2955_v1, %v2346_v2 }
 0x299   : > { %v2957_v33 = vpop.f32.mrf.mxu1 }
 0x29a   : > { %v2958_v16 = vadd.f32 %v2957_v33, %v2956_v4  ;;  %2985 = vmatprep.mubr.bf16.mxu0 %v2405_v6  ;;  %v2403_v18 = vmax.f32 %v2395_v7, 0.0 }
 0x29c   : > { %v2398_v17 = vadd.f32 %v2958_v16, %v2349_v11 }
 0x29e   : > { %v2404_v20 = vmax.f32 %v2398_v17, 0.0 }
 0x2a0   : > { %v2406_v24 = vpack.c.bf16 %v2404_v20, %v2403_v18 }
 0x2a2   : > { %2986 = vmatmul.mubr.bf16.vlgmr.msra.gmra.mxu0 %v2406_v24 }
 0x362   : > { %v2987_v25 = vpop.f32.mrf.mxu0 }
 0x363   : > { %v2521_v34 = vadd.f32 %v2987_v25, %v2873_v28 }
 0x364   : > { %v2512_v12 = vpop.f32.mrf.mxu0 }
 0x365   : > { %v2513_v31 = vadd.f32 %v2873_v28, %v2512_v12 }
 0x366   : > { %v2988_v26 = vpop.f32.mrf.mxu0 }
 0x367   : > { %v2524_v29 = vadd.f32 %v2988_v26, %v2873_v28 }
 0x368   : > { %v2515_v30 = vpop.f32.mrf.mxu0 }
 0x369   : > { %v2516_v32 = vadd.f32 %v2873_v28, %v2515_v30  ;;  %v2900_v36 = vpack.c.bf16 %v2524_v29, %v2521_v34 }
 0x36b   : > { %v2895_v35 = vpack.c.bf16 %v2516_v32, %v2513_v31  ;;  %2902 = vst [vmem:[%s298_s22 + $0x8] sm:$0xff] %v2900_v36  }
 0x36d   : > { %2896 = vst [vmem:[%s298_s22] sm:$0xff] %v2895_v35  }
 0x36e PF: > { %s18_s24 = sadd.s32 1, %s3402_s24  }
 0x36f   : > { %p15_p1 = scmp.ge.s32.totalorder %s18_s24, 4  }
 0x371   :  { %17 = sbr.rel (!%p15_p1) target bundleno = 1 (0x1), region = 83 }
 0x376   :  { %2569 = vsyncpa [#allocation3], 1 }
 0x377   :  { %2571 = vsyncpa [#allocation3 + $0x1], 1 }

</bundles_post_ra>
